<compile_context>
chip_gen: v7x
topology: tpu7x:2x2x1
jax: 0.10.0
libtpu: 0.0.40
codegen_flags: <defaults>
</compile_context>

<pallas_src>
import functools

import jax
import jax.numpy as jnp
from jax.experimental import pallas as pl
from jax.experimental.pallas import tpu as pltpu


def _round_up(x, m):
    return -(-x // m) * m


def _cdiv(a, b):
    return -(-a // b)


def _vmem_capacity_bytes():
    """Generation-aware VMEM capacity (v5e/v6e: 128 MiB, v7x: 64 MiB)."""
    try:
        return int(pltpu.get_tpu_info().vmem_capacity_bytes)
    except Exception:
        return 64 * 1024 * 1024      # conservative (v7x-sized) fallback


def _pick_row_tile(D, K, x_bytes, q_bytes, e_bytes):
    """Largest row tile whose double-buffered streams fit a VMEM budget."""
    budget = _vmem_capacity_bytes() // 4          # headroom for temps / spills
    fixed = 2 * (2 * K * D * e_bytes + K * 4)     # e, e^T, 0.5||e||^2 (invariant)
    per_row = 2 * (D * x_bytes + D * q_bytes + 2 * K + 4)  # x, q, enc(bf16), idx
    per_row += 3 * (K + D) * 4                    # dist / one-hot / diff live tiles
    tn = 1024
    while tn > 128 and fixed + tn * per_row > budget:
        tn //= 2
    return tn


# ---------------------------------------------------------------------------
# Pallas kernel
# ---------------------------------------------------------------------------
def _vq_kernel(x_ref, e_ref, et_ref, esq_ref,                    # inputs
               q_ref, enc_ref, idx_ref, sse_ref, hist_ref,       # outputs
               acc_sse, acc_hist,                                # VMEM scratch
               *, tiles_per_core, rows_per_tile, n_valid, n_padded,
               num_embeddings):
    c = pl.program_id(0)          # core / partial-output index ("parallel")
    i = pl.program_id(1)          # row-tile index ("arbitrary", accumulated)

    @pl.when(i == 0)
    def _():
        acc_sse[...] = jnp.zeros_like(acc_sse)
        acc_hist[...] = jnp.zeros_like(acc_hist)

    x = x_ref[...]                 # (TN, D)  native dtype (bf16 stays bf16)
    e = e_ref[...]                 # (K, D)   native codebook dtype
    et = et_ref[...]               # (D, K)   pre-transposed, x.dtype

    # 0.5 * d(n,k) = 0.5*||e_k||^2 - x_n . e_k   (argmin-equivalent score).
    dots = jnp.dot(x, et, preferred_element_type=jnp.float32)     # (TN, K) MXU
    dist = esq_ref[...] - dots                                    # (TN, K)

    # First-occurrence argmin over the codebook (matches jnp/torch argmin).
    # NOTE: dist == min_d must compare against the same materialized dist.
    k_iota = jax.lax.broadcasted_iota(jnp.int32, dist.shape, 1)
    min_d = jnp.min(dist, axis=1, keepdims=True)                  # (TN, 1)
    idx = jnp.min(jnp.where(dist == min_d, k_iota, num_embeddings),
                  axis=1, keepdims=True)                          # (TN, 1) i32
    onehot = (k_iota == idx).astype(jnp.float32)                  # (TN, K)

    # quantized = one-hot @ codebook (MXU); 0/1 cast to codebook dtype is exact.
    quant = jnp.dot(onehot.astype(e.dtype), e,
                    preferred_element_type=jnp.float32)           # (TN, D) f32

    diff = quant - x.astype(jnp.float32)                          # (TN, D) f32

    # Shrunk accumulators: sublane-reduce to (1, D)/(1, K) partials per step.
    if n_padded == n_valid:   # static: no padded rows anywhere -> no mask work
        acc_sse[...] += jnp.sum(diff * diff, axis=0, keepdims=True)
        acc_hist[...] += jnp.sum(onehot, axis=0, keepdims=True)
    else:
        tile_start = (c * tiles_per_core + i) * rows_per_tile
        full = tile_start + rows_per_tile <= n_valid

        @pl.when(full)
        def _():          # interior tile: unmasked accumulation
            acc_sse[...] += jnp.sum(diff * diff, axis=0, keepdims=True)
            acc_hist[...] += jnp.sum(onehot, axis=0, keepdims=True)

        @pl.when(jnp.logical_not(full))
        def _():          # boundary tile (and fully padded tail tiles)
            row = tile_start + jax.lax.broadcasted_iota(
                jnp.int32, (rows_per_tile, 1), 0)
            m = (row < n_valid).astype(jnp.float32)               # (TN, 1)
            md = diff * m
            acc_sse[...] += jnp.sum(md * md, axis=0, keepdims=True)
            acc_hist[...] += jnp.sum(onehot * m, axis=0, keepdims=True)

    q_ref[...] = quant.astype(q_ref.dtype)
    enc_ref[...] = onehot.astype(enc_ref.dtype)    # bf16 write, exact for 0/1
    idx_ref[...] = idx

    # Single cross-lane reduction only in the epilogue of each core's slice.
    @pl.when(i == pl.num_programs(1) - 1)
    def _():
        sse_ref[...] = jnp.sum(acc_sse[...], axis=1,
                               keepdims=True).reshape(1, 1, 1)
        hist_ref[...] = acc_hist[...].reshape(1, 1, acc_hist.shape[-1])


# ---------------------------------------------------------------------------
# Wrapper
# ---------------------------------------------------------------------------
@functools.partial(jax.jit, static_argnames=("row_block", "encodings_dtype"))
def vq_forward_pallas(inputs, embedding, *, row_block=None,
                      encodings_dtype=jnp.bfloat16):
    """Forward pass of VectorQuantizer. inputs: [..., D]; embedding: [K, D]."""
    in_shape = inputs.shape
    D = in_shape[-1]
    K = embedding.shape[0]
    flat = inputs.reshape(-1, D)
    N = flat.shape[0]

    # --- tiling (static, generation/VMEM-aware) -----------------------------
    x_bytes = inputs.dtype.itemsize
    e_bytes = embedding.dtype.itemsize
    tn = int(row_block) if row_block is not None else _pick_row_tile(
        D, K, x_bytes, x_bytes, e_bytes)
    if N < tn:
        tn = N
    tn = max(8, _round_up(tn, 8))
    total_tiles = _cdiv(N, tn)
    nc = 2 if total_tiles >= 2 else 1     # dual-TC parts: one partial per core
    nt = _cdiv(total_tiles, nc)           # row tiles per core
    n_pad = nc * nt * tn
    if n_pad != N:                        # ragged tail only; masked in-kernel
        flat = jnp.pad(flat, ((0, n_pad - N), (0, 0)))

    # Tiny grid-invariant precomputes: transposed codebook for the distance
    # MXU (no per-step transpose) and pre-halved squared norms (no 2.0* mul).
    emb_t = embedding.T.astype(inputs.dtype)                       # (D, K)
    esq_half = 0.5 * jnp.sum(
        jnp.square(embedding.astype(jnp.float32)), axis=1)[None, :]  # (1, K)

    vmem_cap = _vmem_capacity_bytes()
    vmem_limit = int(max(32 * 2**20, min(vmem_cap * 3 // 4, 96 * 2**20)))

    kernel = functools.partial(
        _vq_kernel,
        tiles_per_core=nt, rows_per_tile=tn,
        n_valid=N, n_padded=n_pad, num_embeddings=K)

    q, enc, idx, sse, hist = pl.pallas_call(
        kernel,
        out_shape=(
            jax.ShapeDtypeStruct((n_pad, D), inputs.dtype),    # quantized
            jax.ShapeDtypeStruct((n_pad, K), encodings_dtype), # one-hot (bf16)
            jax.ShapeDtypeStruct((n_pad, 1), jnp.int32),       # encoding indices
            jax.ShapeDtypeStruct((nc, 1, 1), jnp.float32),     # SSE partials
            jax.ShapeDtypeStruct((nc, 1, K), jnp.float32),     # code-count partials
        ),
        grid_spec=pltpu.PrefetchScalarGridSpec(
            num_scalar_prefetch=0,
            grid=(nc, nt),
            in_specs=[
                pl.BlockSpec((tn, D), lambda c, i: (c * nt + i, 0)),  # x tile
                pl.BlockSpec((K, D), lambda c, i: (0, 0)),            # codebook
                pl.BlockSpec((D, K), lambda c, i: (0, 0)),            # codebook^T
                pl.BlockSpec((1, K), lambda c, i: (0, 0)),            # 0.5||e||^2
            ],
            out_specs=[
                pl.BlockSpec((tn, D), lambda c, i: (c * nt + i, 0)),
                pl.BlockSpec((tn, K), lambda c, i: (c * nt + i, 0)),
                pl.BlockSpec((tn, 1), lambda c, i: (c * nt + i, 0)),
                pl.BlockSpec((1, 1, 1), lambda c, i: (c, 0, 0)),
                pl.BlockSpec((1, 1, K), lambda c, i: (c, 0, 0)),
            ],
            scratch_shapes=[
                pltpu.VMEM((1, D), jnp.float32),   # SSE partial accumulator
                pltpu.VMEM((1, K), jnp.float32),   # histogram partial accumulator
            ],
        ),
        compiler_params=pltpu.CompilerParams(
            dimension_semantics=("parallel", "arbitrary"),
            vmem_limit_bytes=vmem_limit,
        ),
    )(flat, embedding, emb_t, esq_half)

    # --- tiny scalar/vector glue in plain JAX --------------------------------
    q = q[:N].reshape(in_shape)
    enc = enc[:N]
    idx_flat = idx[:N, 0]

    mse = jnp.sum(sse) / jnp.float32(N * D)     # == vq_loss == commit_loss
    counts = jnp.sum(hist, axis=(0, 1))         # (K,)
    avg_probs = counts / jnp.float32(N)
    perplexity = jnp.exp(-jnp.sum(avg_probs * jnp.log(avg_probs + 1e-10)))

    # Straight-through estimator (forward value == quantized codebook entries).
    quantized_st = inputs + jax.lax.stop_gradient(q.astype(inputs.dtype) - inputs)

    return {
        "quantized": quantized_st,
        "vq_loss": mse,
        "commit_loss": mse,
        "perplexity": perplexity,
        "encodings": enc,                       # bf16: exact 0/1 values
        "encoding_indices": idx_flat.reshape(in_shape[:-1]),
    }


class VectorQuantizerPallas:
    """Pallas/JAX re-implementation of the PyTorch VectorQuantizer forward."""

    def __init__(self, num_embeddings, embedding_dim, commitment_cost=0.25,
                 use_ema=True, ema_decay=0.99, ema_epsilon=1e-5, key=None):
        self.num_embeddings = int(num_embeddings)
        self.embedding_dim = int(embedding_dim)
        self.commitment_cost = float(commitment_cost)
        self.use_ema = bool(use_ema)
        self.ema_decay = float(ema_decay)
        self.ema_epsilon = float(ema_epsilon)
        if key is None:
            key = jax.random.PRNGKey(0)
        lim = 1.0 / num_embeddings
        self.embedding = jax.random.uniform(
            key, (num_embeddings, embedding_dim),
            minval=-lim, maxval=lim, dtype=jnp.float32)
        # TODO(synk): EMA codebook update (update_codebook) is a training-time
        # in-place buffer mutation with random dead-code resampling; not
        # translated in this forward-only Pallas port.

    def __call__(self, inputs):
        return vq_forward_pallas(inputs, self.embedding)


# ---------------------------------------------------------------------------
# Main
# ---------------------------------------------------------------------------
if __name__ == "__main__":
    key = jax.random.PRNGKey(0)
    k_emb, k_in = jax.random.split(key)

    num_embeddings, embedding_dim = 128, 64
    vq = VectorQuantizerPallas(num_embeddings, embedding_dim,
                               commitment_cost=0.25, key=k_emb)

    # Use a well-separated "trained" codebook and inputs clustered around its
    # entries, so nearest-code assignments are numerically unambiguous and the
    # exact-index checks are stable across MXU precisions.
    k_cb, k_assign, k_noise = jax.random.split(k_in, 3)
    codebook = jax.random.normal(
        k_cb, (num_embeddings, embedding_dim), dtype=jnp.float32)
    vq.embedding = codebook

    n_rows = 2 * 8 * 8
    assign = jax.random.randint(k_assign, (n_rows,), 0, num_embeddings)
    inputs = (codebook[assign]
              + 0.1 * jax.random.normal(k_noise, (n_rows, embedding_dim))
              ).reshape(2, 8, 8, embedding_dim).astype(jnp.float32)

    # ---- pure-JAX reference ----
    flat = inputs.reshape(-1, embedding_dim)
    d2 = (jnp.sum(flat ** 2, axis=1, keepdims=True)
          + jnp.sum(codebook ** 2, axis=1)
          - 2.0 * jnp.matmul(flat, codebook.T,
                             precision=jax.lax.Precision.HIGHEST))
    ref_idx = jnp.argmin(d2, axis=1)
    ref_q = codebook[ref_idx].reshape(inputs.shape)
    ref_mse = jnp.mean((ref_q - inputs) ** 2)
    ref_enc = jax.nn.one_hot(ref_idx, num_embeddings, dtype=jnp.float32)
    avg = jnp.mean(ref_enc, axis=0)
    ref_perp = jnp.exp(-jnp.sum(avg * jnp.log(avg + 1e-10)))

    def check(out):
        assert jnp.array_equal(out["encoding_indices"].reshape(-1), ref_idx)
        assert jnp.allclose(out["quantized"], ref_q, rtol=1e-4, atol=1e-4)
        assert jnp.allclose(out["vq_loss"], ref_mse, rtol=1e-4, atol=1e-5)
        assert jnp.allclose(out["commit_loss"], ref_mse, rtol=1e-4, atol=1e-5)
        assert jnp.allclose(out["perplexity"], ref_perp, rtol=1e-4, atol=1e-4)
        assert jnp.array_equal(out["encodings"].astype(jnp.float32), ref_enc)

    # Default (single large tile) path.
    out = vq(inputs)
    out = jax.tree_util.tree_map(jax.block_until_ready, out)
    check(out)

    # Also exercise the multi-tile / per-core-partials / ragged-tail path.
    out2 = vq_forward_pallas(inputs, vq.embedding, row_block=48)
    out2 = jax.tree_util.tree_map(jax.block_until_ready, out2)
    check(out2)

    print("KERNEL_OK")
</pallas_src>

<mosaic_0001>
module attributes {stable_mosaic.version = 11 : i64} {
  func.func @_vq_kernel(%arg0: i32, %arg1: i32, %arg2: memref<128x64xf32, #tpu.memory_space<vmem>>, %arg3: memref<128x64xf32, #tpu.memory_space<vmem>>, %arg4: memref<64x128xf32, #tpu.memory_space<vmem>>, %arg5: memref<1x128xf32, #tpu.memory_space<vmem>>, %arg6: memref<128x64xf32, #tpu.memory_space<vmem>>, %arg7: memref<128x128xbf16, #tpu.memory_space<vmem>>, %arg8: memref<128x1xi32, #tpu.memory_space<vmem>>, %arg9: memref<1x1x1xf32, #tpu.memory_space<vmem>>, %arg10: memref<1x1x128xf32, #tpu.memory_space<vmem>>, %arg11: memref<1x64xf32, #tpu.memory_space<vmem>>, %arg12: memref<1x128xf32, #tpu.memory_space<vmem>>) attributes {dimension_semantics = [#tpu.dimension_semantics<parallel>, #tpu.dimension_semantics<arbitrary>], iteration_bounds = array<i64: 1, 1>, scalar_prefetch = 0 : i64, scratch_operands = 2 : i64, tpu.core_type = #tpu.core_type<tc>, window_params = [{transform_indices = @transform_0, window_bounds = array<i64: 128, 64>}, {pipeline_mode = #tpu.pipeline_mode<synchronous>, transform_indices = @transform_1, window_bounds = array<i64: 128, 64>}, {pipeline_mode = #tpu.pipeline_mode<synchronous>, transform_indices = @transform_2, window_bounds = array<i64: 64, 128>}, {pipeline_mode = #tpu.pipeline_mode<synchronous>, transform_indices = @transform_3, window_bounds = array<i64: 1, 128>}, {transform_indices = @transform_4, window_bounds = array<i64: 128, 64>}, {transform_indices = @transform_5, window_bounds = array<i64: 128, 128>}, {transform_indices = @transform_6, window_bounds = array<i64: 128, 1>}, {transform_indices = @transform_7, window_bounds = array<i64: 1, 1, 1>}, {transform_indices = @transform_8, window_bounds = array<i64: 1, 1, 128>}]} {
    %c0_i32 = arith.constant 0 : i32
    %0 = arith.cmpi eq, %arg1, %c0_i32 : i32
    %1 = arith.extui %0 : i1 to i32
    %c0_i32_0 = arith.constant 0 : i32
    %2 = arith.cmpi ne, %1, %c0_i32_0 : i32
    scf.if %2 {
      %cst_29 = arith.constant 0.000000e+00 : f32
      %43 = vector.broadcast %cst_29 : f32 to vector<1x64xf32>
      %c0_30 = arith.constant 0 : index
      %c0_31 = arith.constant 0 : index
      %44 = vector.load %arg11[%c0_30, %c0_31] : memref<1x64xf32, #tpu.memory_space<vmem>>, vector<1x64xf32>
      tpu.vector_store %arg11[%c0_30, %c0_31], %43 {strides = array<i32>} : memref<1x64xf32, #tpu.memory_space<vmem>>, vector<1x64xf32>,
      %cst_32 = arith.constant 0.000000e+00 : f32
      %45 = vector.broadcast %cst_32 : f32 to vector<1x128xf32>
      %c0_33 = arith.constant 0 : index
      %c0_34 = arith.constant 0 : index
      %46 = vector.load %arg12[%c0_33, %c0_34] : memref<1x128xf32, #tpu.memory_space<vmem>>, vector<1x128xf32>
      tpu.vector_store %arg12[%c0_33, %c0_34], %45 {strides = array<i32>} : memref<1x128xf32, #tpu.memory_space<vmem>>, vector<1x128xf32>,
    } else {
    }
    %c0 = arith.constant 0 : index
    %c0_1 = arith.constant 0 : index
    %3 = vector.load %arg2[%c0, %c0_1] : memref<128x64xf32, #tpu.memory_space<vmem>>, vector<128x64xf32>
    %c0_2 = arith.constant 0 : index
    %c0_3 = arith.constant 0 : index
    %4 = vector.load %arg3[%c0_2, %c0_3] : memref<128x64xf32, #tpu.memory_space<vmem>>, vector<128x64xf32>
    %c0_4 = arith.constant 0 : index
    %c0_5 = arith.constant 0 : index
    %5 = vector.load %arg4[%c0_4, %c0_5] : memref<64x128xf32, #tpu.memory_space<vmem>>, vector<64x128xf32>
    %cst = arith.constant dense<0.000000e+00> : vector<128x128xf32>
    %6 = tpu.matmul %3, %5, %cst {dimension_numbers = #tpu.dot_dimension_numbers<[1], [0], [0], [1], [0, 0, 1, 1], [], []>} : vector<128x64xf32>, vector<64x128xf32>, vector<128x128xf32> -> vector<128x128xf32>
    %c0_6 = arith.constant 0 : index
    %c0_7 = arith.constant 0 : index
    %7 = vector.load %arg5[%c0_6, %c0_7] : memref<1x128xf32, #tpu.memory_space<vmem>>, vector<1x128xf32>
    %8 = vector.broadcast %7 : vector<1x128xf32> to vector<128x128xf32>
    %9 = arith.subf %8, %6 : vector<128x128xf32>
    %10 = tpu.iota {dimensions = array<i32: 1>} : vector<128x128xi32>
    %cst_8 = arith.constant dense<0x7F800000> : vector<128xf32>
    %11 = vector.multi_reduction <minimumf>, %9, %cst_8 [1] : vector<128x128xf32> to vector<128xf32>
    %12 = vector.shape_cast %11 : vector<128xf32> to vector<128x1xf32>
    %13 = vector.broadcast %12 : vector<128x1xf32> to vector<128x128xf32>
    %14 = arith.cmpf oeq, %9, %13 : vector<128x128xf32>
    %c128_i32 = arith.constant 128 : i32
    %15 = vector.broadcast %c128_i32 : i32 to vector<128x128xi32>
    %16 = arith.select %14, %10, %15 : vector<128x128xi1>, vector<128x128xi32>
    %cst_9 = arith.constant dense<2147483647> : vector<128xi32>
    %17 = vector.multi_reduction <minsi>, %16, %cst_9 [1] : vector<128x128xi32> to vector<128xi32>
    %18 = vector.shape_cast %17 : vector<128xi32> to vector<128x1xi32>
    %19 = vector.broadcast %18 : vector<128x1xi32> to vector<128x128xi32>
    %20 = arith.cmpi eq, %10, %19 : vector<128x128xi32>
    %21 = arith.extui %20 : vector<128x128xi1> to vector<128x128xi32>
    %22 = arith.sitofp %21 : vector<128x128xi32> to vector<128x128xf32>
    %cst_10 = arith.constant dense<0.000000e+00> : vector<128x64xf32>
    %23 = tpu.matmul %22, %4, %cst_10 {dimension_numbers = #tpu.dot_dimension_numbers<[1], [0], [0], [1], [0, 0, 1, 1], [], []>} : vector<128x128xf32>, vector<128x64xf32>, vector<128x64xf32> -> vector<128x64xf32>
    %24 = arith.subf %23, %3 : vector<128x64xf32>
    %c0_11 = arith.constant 0 : index
    %c0_12 = arith.constant 0 : index
    %25 = vector.load %arg11[%c0_11, %c0_12] : memref<1x64xf32, #tpu.memory_space<vmem>>, vector<1x64xf32>
    %26 = arith.mulf %24, %24 : vector<128x64xf32>
    %cst_13 = arith.constant dense<0.000000e+00> : vector<64xf32>
    %27 = vector.multi_reduction <add>, %26, %cst_13 [0] : vector<128x64xf32> to vector<64xf32>
    %28 = vector.shape_cast %27 : vector<64xf32> to vector<1x64xf32>
    %29 = arith.addf %25, %28 : vector<1x64xf32>
    %c0_14 = arith.constant 0 : index
    %c0_15 = arith.constant 0 : index
    %30 = vector.load %arg11[%c0_14, %c0_15] : memref<1x64xf32, #tpu.memory_space<vmem>>, vector<1x64xf32>
    tpu.vector_store %arg11[%c0_14, %c0_15], %29 {strides = array<i32>} : memref<1x64xf32, #tpu.memory_space<vmem>>, vector<1x64xf32>,
    %c0_16 = arith.constant 0 : index
    %c0_17 = arith.constant 0 : index
    %31 = vector.load %arg12[%c0_16, %c0_17] : memref<1x128xf32, #tpu.memory_space<vmem>>, vector<1x128xf32>
    %cst_18 = arith.constant dense<0.000000e+00> : vector<128xf32>
    %32 = vector.multi_reduction <add>, %22, %cst_18 [0] : vector<128x128xf32> to vector<128xf32>
    %33 = vector.shape_cast %32 : vector<128xf32> to vector<1x128xf32>
    %34 = arith.addf %31, %33 : vector<1x128xf32>
    %c0_19 = arith.constant 0 : index
    %c0_20 = arith.constant 0 : index
    %35 = vector.load %arg12[%c0_19, %c0_20] : memref<1x128xf32, #tpu.memory_space<vmem>>, vector<1x128xf32>
    tpu.vector_store %arg12[%c0_19, %c0_20], %34 {strides = array<i32>} : memref<1x128xf32, #tpu.memory_space<vmem>>, vector<1x128xf32>,
    %c0_21 = arith.constant 0 : index
    %c0_22 = arith.constant 0 : index
    %36 = vector.load %arg6[%c0_21, %c0_22] : memref<128x64xf32, #tpu.memory_space<vmem>>, vector<128x64xf32>
    tpu.vector_store %arg6[%c0_21, %c0_22], %23 {strides = array<i32>} : memref<128x64xf32, #tpu.memory_space<vmem>>, vector<128x64xf32>,
    %37 = arith.truncf %22 : vector<128x128xf32> to vector<128x128xbf16>
    %c0_23 = arith.constant 0 : index
    %c0_24 = arith.constant 0 : index
    %38 = vector.load %arg7[%c0_23, %c0_24] : memref<128x128xbf16, #tpu.memory_space<vmem>>, vector<128x128xbf16>
    tpu.vector_store %arg7[%c0_23, %c0_24], %37 {strides = array<i32>} : memref<128x128xbf16, #tpu.memory_space<vmem>>, vector<128x128xbf16>,
    %c0_25 = arith.constant 0 : index
    %c0_26 = arith.constant 0 : index
    %39 = vector.load %arg8[%c0_25, %c0_26] : memref<128x1xi32, #tpu.memory_space<vmem>>, vector<128x1xi32>
    tpu.vector_store %arg8[%c0_25, %c0_26], %18 {strides = array<i32>} : memref<128x1xi32, #tpu.memory_space<vmem>>, vector<128x1xi32>,
    %c0_i32_27 = arith.constant 0 : i32
    %40 = arith.cmpi eq, %arg1, %c0_i32_27 : i32
    %41 = arith.extui %40 : i1 to i32
    %c0_i32_28 = arith.constant 0 : i32
    %42 = arith.cmpi ne, %41, %c0_i32_28 : i32
    scf.if %42 {
      %c0_29 = arith.constant 0 : index
      %c0_30 = arith.constant 0 : index
      %43 = vector.load %arg11[%c0_29, %c0_30] : memref<1x64xf32, #tpu.memory_space<vmem>>, vector<1x64xf32>
      %cst_31 = arith.constant dense<0.000000e+00> : vector<1xf32>
      %44 = vector.multi_reduction <add>, %43, %cst_31 [1] : vector<1x64xf32> to vector<1xf32>
      %45 = vector.shape_cast %44 : vector<1xf32> to vector<1x1xf32>
      %46 = vector.shape_cast %45 : vector<1x1xf32> to vector<1x1x1xf32>
      %c0_32 = arith.constant 0 : index
      %c0_33 = arith.constant 0 : index
      %c0_34 = arith.constant 0 : index
      %47 = vector.load %arg9[%c0_32, %c0_33, %c0_34] : memref<1x1x1xf32, #tpu.memory_space<vmem>>, vector<1x1x1xf32>
      tpu.vector_store %arg9[%c0_32, %c0_33, %c0_34], %46 {strides = array<i32>} : memref<1x1x1xf32, #tpu.memory_space<vmem>>, vector<1x1x1xf32>,
      %c0_35 = arith.constant 0 : index
      %c0_36 = arith.constant 0 : index
      %48 = vector.load %arg12[%c0_35, %c0_36] : memref<1x128xf32, #tpu.memory_space<vmem>>, vector<1x128xf32>
      %49 = vector.shape_cast %48 : vector<1x128xf32> to vector<1x1x128xf32>
      %c0_37 = arith.constant 0 : index
      %c0_38 = arith.constant 0 : index
      %c0_39 = arith.constant 0 : index
      %50 = vector.load %arg10[%c0_37, %c0_38, %c0_39] : memref<1x1x128xf32, #tpu.memory_space<vmem>>, vector<1x1x128xf32>
      tpu.vector_store %arg10[%c0_37, %c0_38, %c0_39], %49 {strides = array<i32>} : memref<1x1x128xf32, #tpu.memory_space<vmem>>, vector<1x1x128xf32>,
    } else {
    }
    return
  }
  func.func @transform_0(%arg0: i32, %arg1: i32) -> (i32, i32) {
    %c1_i32 = arith.constant 1 : i32
    %0 = arith.muli %arg0, %c1_i32 : i32
    %1 = arith.addi %0, %arg1 : i32
    %c0_i32 = arith.constant 0 : i32
    %c0_i32_0 = arith.constant 0 : i32
    return %1, %c0_i32 : i32, i32
  }
  func.func @transform_1(%arg0: i32, %arg1: i32) -> (i32, i32) {
    %c0_i32 = arith.constant 0 : i32
    %c0_i32_0 = arith.constant 0 : i32
    %c0_i32_1 = arith.constant 0 : i32
    return %c0_i32, %c0_i32_0 : i32, i32
  }
  func.func @transform_2(%arg0: i32, %arg1: i32) -> (i32, i32) {
    %c0_i32 = arith.constant 0 : i32
    %c0_i32_0 = arith.constant 0 : i32
    %c0_i32_1 = arith.constant 0 : i32
    return %c0_i32, %c0_i32_0 : i32, i32
  }
  func.func @transform_3(%arg0: i32, %arg1: i32) -> (i32, i32) {
    %c0_i32 = arith.constant 0 : i32
    %c0_i32_0 = arith.constant 0 : i32
    %c0_i32_1 = arith.constant 0 : i32
    return %c0_i32, %c0_i32_0 : i32, i32
  }
  func.func @transform_4(%arg0: i32, %arg1: i32) -> (i32, i32) {
    %c1_i32 = arith.constant 1 : i32
    %0 = arith.muli %arg0, %c1_i32 : i32
    %1 = arith.addi %0, %arg1 : i32
    %c0_i32 = arith.constant 0 : i32
    %c0_i32_0 = arith.constant 0 : i32
    return %1, %c0_i32 : i32, i32
  }
  func.func @transform_5(%arg0: i32, %arg1: i32) -> (i32, i32) {
    %c1_i32 = arith.constant 1 : i32
    %0 = arith.muli %arg0, %c1_i32 : i32
    %1 = arith.addi %0, %arg1 : i32
    %c0_i32 = arith.constant 0 : i32
    %c0_i32_0 = arith.constant 0 : i32
    return %1, %c0_i32 : i32, i32
  }
  func.func @transform_6(%arg0: i32, %arg1: i32) -> (i32, i32) {
    %c1_i32 = arith.constant 1 : i32
    %0 = arith.muli %arg0, %c1_i32 : i32
    %1 = arith.addi %0, %arg1 : i32
    %c0_i32 = arith.constant 0 : i32
    %c0_i32_0 = arith.constant 0 : i32
    return %1, %c0_i32 : i32, i32
  }
  func.func @transform_7(%arg0: i32, %arg1: i32) -> (i32, i32, i32) {
    %c0_i32 = arith.constant 0 : i32
    %c0_i32_0 = arith.constant 0 : i32
    %c0_i32_1 = arith.constant 0 : i32
    return %arg0, %c0_i32, %c0_i32_0 : i32, i32, i32
  }
  func.func @transform_8(%arg0: i32, %arg1: i32) -> (i32, i32, i32) {
    %c0_i32 = arith.constant 0 : i32
    %c0_i32_0 = arith.constant 0 : i32
    %c0_i32_1 = arith.constant 0 : i32
    return %arg0, %c0_i32, %c0_i32_0 : i32, i32, i32
  }
}

</mosaic_0001>

<bundles_post_ra>
// kernel: squeeze.1
= control target key start
LH: loop header
LB: loop body
LE: loop exit
PB: predicated region body
PF: predicated region fallthrough
CT: control target
= control target key end

     0   :  { %s207_s0 = inlined_call_operand.vmem [shape: s32[128], index: 0, kind: input, shape index: {}]   ;;  %s208_s1 = inlined_call_operand.hbm [shape: s32[2,8,8], index: 1, kind: output, shape index: {}]  }
   0x1   :  { %v5_v0 = vld [vmem:[%s207_s0] sm:$0x1] }
   0x2   :  { %6 = vst [vmem:[#allocation2] sm:$0x1] %v5_v0 }
   0x3   :  { %2 = vsyncpa [#allocation1], 0  ;;  %s150_s0 = smov 120   ;;  %s151_s8 = smov 104   ;;  %vm8_vm0 = vcmask 64512  }
   0x4   :  { %s152_s9 = smov 112   ;;  %s153_s10 = smov 96  }
   0x5   :  { %s154_s11 = smov 88   ;;  %s155_s12 = smov 80  }
   0x6   :  { %s156_s13 = smov 72   ;;  %s157_s14 = smov 64  }
   0x7   :  { %s158_s15 = smov 56   ;;  %s159_s16 = smov 48  }
   0x8   :  { %s160_s17 = smov 40   ;;  %s161_s18 = smov 32  }
   0x9   :  { %v10_v1 = vld [vmem:[#allocation2] sm:$0x1]   ;;  %s162_s19 = smov 24   ;;  %s163_s20 = smov 16  }
   0xa   :  { %v22_v2 = vld [vmem:[#allocation2] sm:$0x1]   ;;  %11 = vrot.lane.b32.xlu0 %v10_v1, %s150_s0  ;;  %s164_s21 = smov 8   ;;  %s165_s22 = smov [#allocation0]  }
   0xb   :  { %23 = vrot.lane.b32.xlu1 %v22_v2, %s151_s8  ;;  %v16_v3 = vld [vmem:[#allocation2] sm:$0x1]   ;;  %s104_s23 = sshll.u32 %s165_s22, 4  ;;  %s105_s23 = int_to_ptr.vmem [resolvable:$true] %s104_s23 }
   0xc   :  { %v28_v4 = vld [vmem:[#allocation2] sm:$0x1]   ;;  %s126_s24 = scalar_lea.vmem %s105_s23, 256  ;;  %p131_p1 = scmp.lt.s32.totalorder %s105_s23, %s105_s23 }
   0xd   :  { %v34_v5 = vld [vmem:[#allocation2] sm:$0x1]   ;;  %p127_p0 = scmp.ne.s32.totalorder %s105_s23, %s126_s24  ;;  %p132_p2 = scmp.lt.s32.totalorder %s126_s24, %s126_s24 }
   0xe   :  { %17 = vrot.lane.b32.xlu0 %v16_v3, %s152_s9  ;;  %v40_v6 = vld [vmem:[#allocation2] sm:$0x1]  }
   0xf   :  { %29 = vrot.lane.b32.xlu1 %v28_v4, %s153_s10  ;;  %v46_v7 = vld [vmem:[#allocation2] sm:$0x1]   ;;  %p133_p3 = por %p132_p2, %p131_p1 }
  0x10   :  { %v52_v8 = vld [vmem:[#allocation2] sm:$0x1]  }
  0x11   :  { %v58_v9 = vld [vmem:[#allocation2] sm:$0x1]   ;;  %p134_p4 = pnand %p133_p3, %p127_p0 }
  0x12   :  { %35 = vrot.lane.b32.xlu0 %v34_v5, %s154_s11  ;;  %v64_v10 = vld [vmem:[#allocation2] sm:$0x1]  }
  0x13   :  { %41 = vrot.lane.b32.xlu1 %v40_v6, %s155_s12  ;;  %v7_v11 = vld [vmem:[#allocation2] sm:$0x1]  }
  0x14   :  { %9 = vst.msk [vmem:[#allocation0] sm:$0x1] %vm8_vm0, %v7_v11   ;;  %v70_v12 = vld [vmem:[#allocation2] sm:$0x1]  }
  0x15   :  { %v76_v13 = vld [vmem:[#allocation2] sm:$0x1]  }
  0x16   :  { %47 = vrot.lane.b32.xlu0 %v46_v7, %s156_s13  ;;  %v82_v14 = vld [vmem:[#allocation2] sm:$0x1]  }
  0x17   :  { %53 = vrot.lane.b32.xlu1 %v52_v8, %s157_s14  ;;  %v88_v15 = vld [vmem:[#allocation2] sm:$0x1]  }
  0x18   :  { %v94_v16 = vld [vmem:[#allocation2] sm:$0x1]  }
  0x1a   :  { %59 = vrot.lane.b32.xlu0 %v58_v9, %s158_s15 }
  0x1b   :  { %65 = vrot.lane.b32.xlu1 %v64_v10, %s159_s16 }
  0x1e   :  { %71 = vrot.lane.b32.xlu0 %v70_v12, %s160_s17 }
  0x1f   :  { %77 = vrot.lane.b32.xlu1 %v76_v13, %s161_s18 }
  0x22   :  { %83 = vrot.lane.b32.xlu0 %v82_v14, %s162_s19 }
  0x23   :  { %89 = vrot.lane.b32.xlu1 %v88_v15, %s163_s20 }
  0x26   :  { %95 = vrot.lane.b32.xlu0 %v94_v16, %s164_s21 }
  0x7c   :  { %v12_v17 = vpop.permute.xlu0 %11  }
  0x7d   :  { %v24_v18 = vpop.permute.xlu1 %23   ;;  %15 = vst.msk [vmem:[#allocation0 + $0x1] sm:$0x1] %vm8_vm0, %v12_v17  }
  0x7e   :  { %27 = vst.msk [vmem:[#allocation0 + $0x3] sm:$0x1] %vm8_vm0, %v24_v18  }
  0x80   :  { %v18_v19 = vpop.permute.xlu0 %17  }
  0x81   :  { %v30_v20 = vpop.permute.xlu1 %29   ;;  %21 = vst.msk [vmem:[#allocation0 + $0x2] sm:$0x1] %vm8_vm0, %v18_v19  }
  0x82   :  { %33 = vst.msk [vmem:[#allocation0 + $0x4] sm:$0x1] %vm8_vm0, %v30_v20  }
  0x84   :  { %v36_v21 = vpop.permute.xlu0 %35  }
  0x85   :  { %v42_v22 = vpop.permute.xlu1 %41   ;;  %39 = vst.msk [vmem:[#allocation0 + $0x5] sm:$0x1] %vm8_vm0, %v36_v21  }
  0x86   :  { %45 = vst.msk [vmem:[#allocation0 + $0x6] sm:$0x1] %vm8_vm0, %v42_v22  }
  0x88   :  { %v48_v23 = vpop.permute.xlu0 %47  }
  0x89   :  { %v54_v24 = vpop.permute.xlu1 %53   ;;  %51 = vst.msk [vmem:[#allocation0 + $0x7] sm:$0x1] %vm8_vm0, %v48_v23  }
  0x8a   :  { %57 = vst.msk [vmem:[#allocation0 + $0x8] sm:$0x1] %vm8_vm0, %v54_v24  }
  0x8c   :  { %v60_v25 = vpop.permute.xlu0 %59  }
  0x8d   :  { %v66_v26 = vpop.permute.xlu1 %65   ;;  %63 = vst.msk [vmem:[#allocation0 + $0x9] sm:$0x1] %vm8_vm0, %v60_v25  }
  0x8e   :  { %69 = vst.msk [vmem:[#allocation0 + $0xa] sm:$0x1] %vm8_vm0, %v66_v26  }
  0x90   :  { %v72_v27 = vpop.permute.xlu0 %71  }
  0x91   :  { %v78_v28 = vpop.permute.xlu1 %77   ;;  %75 = vst.msk [vmem:[#allocation0 + $0xb] sm:$0x1] %vm8_vm0, %v72_v27  }
  0x92   :  { %81 = vst.msk [vmem:[#allocation0 + $0xc] sm:$0x1] %vm8_vm0, %v78_v28  }
  0x94   :  { %v84_v29 = vpop.permute.xlu0 %83  }
  0x95   :  { %v90_v30 = vpop.permute.xlu1 %89   ;;  %87 = vst.msk [vmem:[#allocation0 + $0xd] sm:$0x1] %vm8_vm0, %v84_v29  }
  0x96   :  { %93 = vst.msk [vmem:[#allocation0 + $0xe] sm:$0x1] %vm8_vm0, %v90_v30  }
  0x98   :  { %v96_v31 = vpop.permute.xlu0 %95  }
  0x99   :  { %99 = vst.msk [vmem:[#allocation0 + $0xf] sm:$0x1] %vm8_vm0, %v96_v31  }
  0x9a   :  { %137 = shalt.err (!%p134_p4)
}
  0x9b   :  { %s138_s27 = scalar_lea.hbm %s208_s1, 256 }
  0x9c   :  { %p139_p5 = scmp.ne.s32.totalorder %s208_s1, %s138_s27  ;;  %p142_p6 = scmp.lt.u32.totalorder %s138_s27, %s208_s1 }
  0x9e   :  { %p144_p7 = pnand %p142_p6, %p139_p5 }
  0xa0   :  { %147 = shalt.err (!%p144_p7)
}
  0xa1   :  { %107 = dma.vmem_to_hbm [thread:$0]  %s105_s23, 256, %s208_s1, [#allocation1]  }
  0xa2   :  { %148 = dma.done.wait [#allocation1], 256  }
  0xa3   :  { %149 = vsyncadd [#allocation1], 4294967040 }
  0xa4   :  { %109 = vsyncpa [#allocation1], 1 }

// kernel: vq_forward_pallas.1
= control target key start
LH: loop header
LB: loop body
LE: loop exit
PB: predicated region body
PF: predicated region fallthrough
CT: control target
= control target key end

     0   :  { %14 = vsyncpa [#allocation5], 0  ;;  %vm123_vm0 = vcmask 523264   ;;  %s2258_s0 = inlined_call_operand.vmem [shape: f32[128,64], index: 0, kind: input, shape index: {}]   ;;  %s2259_s1 = inlined_call_operand.vmem [shape: f32[128,64], index: 1, kind: input, shape index: {}]   ;;  %s2260_s2 = inlined_call_operand.vmem [shape: f32[64,128], index: 2, kind: input, shape index: {}]   ;;  %s2261_s3 = inlined_call_operand.vmem [shape: f32[1,128], index: 3, kind: input, shape index: {}]   ;;  %s2262_s4 = inlined_call_operand.vmem [shape: f32[128,64], index: 4, kind: output, shape index: {0}]   ;;  %s2263_s5 = inlined_call_operand.hbm [shape: bf16[128,128], index: 5, kind: output, shape index: {1}]   ;;  %s2264_s6 = inlined_call_operand.vmem [shape: s32[128,1], index: 6, kind: output, shape index: {2}]   ;;  %s2265_s7 = inlined_call_operand.hbm [shape: f32[1,1,1], index: 7, kind: output, shape index: {3}]   ;;  %s2266_s8 = inlined_call_operand.vmem [shape: f32[1,1,128], index: 8, kind: output, shape index: {4}]  }
   0x1   :  { %v115_v0 = vld [vmem:[%s2260_s2] sm:$0xff]  ;;  %v116_v1 = vld [vmem:[%s2260_s2 + $0x8] sm:$0xff]  ;;  %v117_v2 = vld [vmem:[%s2260_s2 + $0x10] sm:$0xff] }
   0x2   :  { %v1404_v3 = vpack.c.bf16 %v116_v1, %v115_v0  ;;  %v118_v4 = vld [vmem:[%s2260_s2 + $0x18] sm:$0xff]  ;;  %v119_v6 = vld [vmem:[%s2260_s2 + $0x20] sm:$0xff]  ;;  %v120_v7 = vld [vmem:[%s2260_s2 + $0x28] sm:$0xff] }
   0x3   :  { %v1408_v5 = vpack.c.bf16 %v118_v4, %v117_v2  ;;  %v83_v8 = vld [vmem:[%s2258_s0] sm:$0xff]  ;;  %v1412_v9 = vpack.c.bf16 %v120_v7, %v119_v6  ;;  %v121_v10 = vld [vmem:[%s2260_s2 + $0x30] sm:$0xff]  ;;  %v122_v11 = vld [vmem:[%s2260_s2 + $0x38] sm:$0xff] }
   0x4   :  { %1405 = vmatprep.subr.bf16.mxu0 %v1404_v3  ;;  %1324 = vmatprep.mubr.msk.f32.mxu0 %vm123_vm0, %v83_v8 }
   0x5   :  { %1407 = vmatpush3.bf16.msra.mxu0 %v1404_v3 }
   0x6   :  { %1409 = vmatprep.subr.bf16.mxu0 %v1408_v5 }
   0x9   :  { %1411 = vmatpush3.bf16.msra.mxu0 %v1408_v5 }
   0xa   :  { %15 = vsyncpa [#allocation7], 0  ;;  %1413 = vmatprep.subr.bf16.mxu0 %v1412_v9  ;;  %v1416_v12 = vpack.c.bf16 %v122_v11, %v121_v10  ;;  %v84_v13 = vld [vmem:[%s2258_s0 + $0x8] sm:$0xff]  ;;  %v85_v14 = vld [vmem:[%s2258_s0 + $0x10] sm:$0xff]  ;;  %v340_v61 = vlaneseq }
   0xb   :  { %v86_v15 = vld [vmem:[%s2258_s0 + $0x18] sm:$0xff]  ;;  %v87_v16 = vld [vmem:[%s2258_s0 + $0x20] sm:$0xff]  ;;  %v88_v17 = vld [vmem:[%s2258_s0 + $0x28] sm:$0xff] }
   0xc   :  { %v89_v18 = vld [vmem:[%s2258_s0 + $0x30] sm:$0xff]  ;;  %v90_v19 = vld [vmem:[%s2258_s0 + $0x38] sm:$0xff]  ;;  %v91_v20 = vld [vmem:[%s2258_s0 + $0x40] sm:$0xff]  ;;  %v1713_v62 = vand.u32 127, %v340_v61 }
   0xd   :  { %1415 = vmatpush3.bf16.msra.mxu0 %v1412_v9  ;;  %v92_v21 = vld [vmem:[%s2258_s0 + $0x48] sm:$0xff]  ;;  %v93_v22 = vld [vmem:[%s2258_s0 + $0x50] sm:$0xff]  ;;  %v94_v23 = vld [vmem:[%s2258_s0 + $0x58] sm:$0xff] }
   0xe   :  { %1417 = vmatprep.subr.bf16.mxu0 %v1416_v12  ;;  %v95_v24 = vld [vmem:[%s2258_s0 + $0x60] sm:$0xff]  ;;  %v96_v25 = vld [vmem:[%s2258_s0 + $0x68] sm:$0xff]  ;;  %v97_v26 = vld [vmem:[%s2258_s0 + $0x70] sm:$0xff] }
   0xf   :  { %v98_v27 = vld [vmem:[%s2258_s0 + $0x78] sm:$0xff]  ;;  %v1156_v28 = vld [vmem:[%s2261_s3] ss:$0 sm:$0xff] }
  0x11   :  { %1419 = vmatpush3.bf16.msra.mxu0 %v1416_v12 }
  0x14   :  { %1325 = vmatmul.mubr.msk.f32.vlgmr.msra.gmra.mrb[0].mxu0 %vm123_vm0, %v84_v13 }
  0x15   :  { %1327 = vmatprep.mubr.msk.f32.mxu0 %vm123_vm0, %v85_v14 }
  0x18   :  { %1328 = vmatmul.mubr.msk.f32.gmra.mrb[2].mxu0 %vm123_vm0, %v86_v15 }
  0x19   :  { %1330 = vmatprep.mubr.msk.f32.mxu0 %vm123_vm0, %v87_v16 }
  0x1c   :  { %1331 = vmatmul.mubr.msk.f32.gmra.mrb[4].mxu0 %vm123_vm0, %v88_v17 }
  0x1d   :  { %1333 = vmatprep.mubr.msk.f32.mxu0 %vm123_vm0, %v89_v18 }
  0x20   :  { %1334 = vmatmul.mubr.msk.f32.gmra.mrb[6].mxu0 %vm123_vm0, %v90_v19 }
  0x21   :  { %1336 = vmatprep.mubr.msk.f32.mxu0 %vm123_vm0, %v91_v20 }
  0x24   :  { %1337 = vmatmul.mubr.msk.f32.gmra.mrb[8].mxu0 %vm123_vm0, %v92_v21 }
  0x25   :  { %1339 = vmatprep.mubr.msk.f32.mxu0 %vm123_vm0, %v93_v22 }
  0x28   :  { %1340 = vmatmul.mubr.msk.f32.gmra.mrb[10].mxu0 %vm123_vm0, %v94_v23 }
  0x29   :  { %1342 = vmatprep.mubr.msk.f32.mxu0 %vm123_vm0, %v95_v24 }
  0x2c   :  { %1343 = vmatmul.mubr.msk.f32.gmra.mrb[12].mxu0 %vm123_vm0, %v96_v25 }
  0x2d   :  { %1345 = vmatprep.mubr.msk.f32.mxu0 %vm123_vm0, %v97_v26 }
  0x30   :  { %1346 = vmatmul.mubr.msk.f32.gmra.mrb[14].mxu0 %vm123_vm0, %v98_v27 }
  0xe7   :  { %v1326_v29 = vpop.f32.mrb[0].mxu0 }
  0xe8   :  { %v238_v30 = vpop.f32.mrb[1].mxu0  ;;  %v325_v34 = vsub.f32 %v1156_v28, %v1326_v29 }
  0xe9   :  { %v324_v31 = vsub.f32 %v1156_v28, %v238_v30 }
  0xeb   :  { %342 = vmin.xlane.f32.xlu0 %v324_v31  ;;  %v1329_v32 = vpop.f32.mrb[2].mxu0 }
  0xec   :  { %v248_v33 = vpop.f32.mrb[3].mxu0  ;;  %v327_v38 = vsub.f32 %v1156_v28, %v1329_v32 }
  0xed   :  { %v326_v35 = vsub.f32 %v1156_v28, %v248_v33 }
  0xef   :  { %344 = vmin.xlane.f32.xlu0 %v325_v34  ;;  %346 = vmin.xlane.f32.xlu1 %v326_v35  ;;  %v1332_v36 = vpop.f32.mrb[4].mxu0 }
  0xf0   :  { %v258_v37 = vpop.f32.mrb[5].mxu0  ;;  %v1680_v42 = vsub.f32 %v1156_v28, %v1332_v36 }
  0xf1   :  { %v328_v39 = vsub.f32 %v1156_v28, %v258_v37 }
  0xf3   :  { %348 = vmin.xlane.f32.xlu1 %v327_v38  ;;  %350 = vmin.xlane.f32.xlu0 %v328_v39  ;;  %v1335_v40 = vpop.f32.mrb[6].mxu0 }
  0xf4   :  { %v268_v41 = vpop.f32.mrb[7].mxu0  ;;  %v1686_v46 = vsub.f32 %v1156_v28, %v1335_v40 }
  0xf5   :  { %v1682_v43 = vsub.f32 %v1156_v28, %v268_v41 }
  0xf7   :  { %352 = vmin.xlane.f32.xlu1 %v1680_v42  ;;  %354 = vmin.xlane.f32.xlu0 %v1682_v43  ;;  %v1338_v44 = vpop.f32.mrb[8].mxu0 }
  0xf8   :  { %v278_v45 = vpop.f32.mrb[9].mxu0  ;;  %v1692_v50 = vsub.f32 %v1156_v28, %v1338_v44 }
  0xf9   :  { %v1688_v47 = vsub.f32 %v1156_v28, %v278_v45 }
  0xfb   :  { %356 = vmin.xlane.f32.xlu1 %v1686_v46  ;;  %358 = vmin.xlane.f32.xlu0 %v1688_v47  ;;  %v1341_v48 = vpop.f32.mrb[10].mxu0 }
  0xfc   :  { %v288_v49 = vpop.f32.mrb[11].mxu0  ;;  %v1698_v54 = vsub.f32 %v1156_v28, %v1341_v48 }
  0xfd   :  { %v1694_v51 = vsub.f32 %v1156_v28, %v288_v49 }
  0xff   :  { %360 = vmin.xlane.f32.xlu1 %v1692_v50  ;;  %362 = vmin.xlane.f32.xlu0 %v1694_v51  ;;  %v1344_v52 = vpop.f32.mrb[12].mxu0 }
 0x100   :  { %v298_v53 = vpop.f32.mrb[13].mxu0  ;;  %v1704_v58 = vsub.f32 %v1156_v28, %v1344_v52 }
 0x101   :  { %v1700_v55 = vsub.f32 %v1156_v28, %v298_v53 }
 0x103   :  { %364 = vmin.xlane.f32.xlu1 %v1698_v54  ;;  %366 = vmin.xlane.f32.xlu0 %v1700_v55  ;;  %v1347_v56 = vpop.f32.mrb[14].mxu0 }
 0x104   :  { %v308_v57 = vpop.f32.mrb[15].mxu0  ;;  %v1710_v60 = vsub.f32 %v1156_v28, %v1347_v56 }
 0x105   :  { %v1706_v59 = vsub.f32 %v1156_v28, %v308_v57 }
 0x107   :  { %368 = vmin.xlane.f32.xlu1 %v1704_v58  ;;  %370 = vmin.xlane.f32.xlu0 %v1706_v59 }
 0x10b   :  { %372 = vmin.xlane.f32.xlu1 %v1710_v60 }
 0x178   :  { %v343_v63 = vpop.xlane.xlu0 %342 }
 0x179   :  { %vm374_vm1 = vcmp.eq.f32.partialorder %v324_v31, %v343_v63 }
 0x17a   :  { %v1716_v0 = vsel %vm374_vm1, %v1713_v62, 128 }
 0x17b   :  { %v407_v1 = vshra.s32 %v1716_v0, 16 }
 0x17c   :  { %v345_v2 = vpop.xlane.xlu0 %344  ;;  %v347_v3 = vpop.xlane.xlu1 %346 }
 0x17d   :  { %vm375_vm2 = vcmp.eq.f32.partialorder %v325_v34, %v345_v2  ;;  %vm376_vm3 = vcmp.eq.f32.partialorder %v326_v35, %v347_v3  ;;  %v1719_v4 = vcvt.s32.f32 %v407_v1  ;;  %v100_v2 = vld [vmem:[%s2259_s1 + $0x8] sm:$0xff]  ;;  %v101_v3 = vld [vmem:[%s2259_s1 + $0x10] sm:$0xff] }
 0x17e   :  { %v1722_v5 = vsel %vm375_vm2, %v1713_v62, 128  ;;  %v1725_v6 = vsel %vm376_vm3, %v1713_v62, 128 }
 0x17f   :  { %410 = vmin.xlane.f32.xlu0 %v1719_v4  ;;  %v421_v7 = vshra.s32 %v1722_v5, 16  ;;  %v435_v8 = vshra.s32 %v1725_v6, 16 }
 0x180   :  { %v349_v9 = vpop.xlane.xlu1 %348  ;;  %v351_v10 = vpop.xlane.xlu0 %350 }
 0x181   :  { %vm377_vm4 = vcmp.eq.f32.partialorder %v327_v38, %v349_v9  ;;  %vm378_vm5 = vcmp.eq.f32.partialorder %v328_v39, %v351_v10  ;;  %v1730_v11 = vcvt.s32.f32 %v421_v7  ;;  %v1732_v12 = vcvt.s32.f32 %v435_v8  ;;  %v102_v8 = vld [vmem:[%s2259_s1 + $0x18] sm:$0xff]  ;;  %v103_v10 = vld [vmem:[%s2259_s1 + $0x20] sm:$0xff] }
 0x182   :  { %v1735_v13 = vsel %vm377_vm4, %v1713_v62, 128  ;;  %v1738_v14 = vsel %vm378_vm5, %v1713_v62, 128  ;;  %v1424_v9 = vpack.c.bf16 %v102_v8, %v101_v3 }
 0x183   :  { %424 = vmin.xlane.f32.xlu1 %v1730_v11  ;;  %438 = vmin.xlane.f32.xlu0 %v1732_v12  ;;  %v449_v15 = vshra.s32 %v1735_v13, 16  ;;  %v463_v16 = vshra.s32 %v1738_v14, 16 }
 0x184   :  { %v353_v17 = vpop.xlane.xlu1 %352  ;;  %v355_v18 = vpop.xlane.xlu0 %354 }
 0x185   :  { %vm379_vm6 = vcmp.eq.f32.partialorder %v1680_v42, %v353_v17  ;;  %vm380_vm7 = vcmp.eq.f32.partialorder %v1682_v43, %v355_v18  ;;  %v1746_v19 = vcvt.s32.f32 %v449_v15  ;;  %v1748_v20 = vcvt.s32.f32 %v463_v16  ;;  %v104_v15 = vld [vmem:[%s2259_s1 + $0x28] sm:$0xff]  ;;  %v105_v17 = vld [vmem:[%s2259_s1 + $0x30] sm:$0xff]  ;;  %v106_v18 = vld [vmem:[%s2259_s1 + $0x38] sm:$0xff] }
 0x186   :  { %v1751_v21 = vsel %vm379_vm6, %v1713_v62, 128  ;;  %v1754_v22 = vsel %vm380_vm7, %v1713_v62, 128  ;;  %v1428_v16 = vpack.c.bf16 %v104_v15, %v103_v10 }
 0x187   :  { %452 = vmin.xlane.f32.xlu1 %v1746_v19  ;;  %466 = vmin.xlane.f32.xlu0 %v1748_v20  ;;  %v477_v23 = vshra.s32 %v1751_v21, 16  ;;  %v491_v24 = vshra.s32 %v1754_v22, 16 }
 0x188   :  { %v357_v25 = vpop.xlane.xlu1 %356  ;;  %v359_v26 = vpop.xlane.xlu0 %358 }
 0x189   :  { %vm381_vm8 = vcmp.eq.f32.partialorder %v1686_v46, %v357_v25  ;;  %vm382_vm9 = vcmp.eq.f32.partialorder %v1688_v47, %v359_v26  ;;  %v1762_v27 = vcvt.s32.f32 %v477_v23  ;;  %v1764_v28 = vcvt.s32.f32 %v491_v24  ;;  %v107_v24 = vld [vmem:[%s2259_s1 + $0x40] sm:$0xff]  ;;  %v108_v25 = vld [vmem:[%s2259_s1 + $0x48] sm:$0xff] }
 0x18a   :  { %v1767_v29 = vsel %vm381_vm8, %v1713_v62, 128  ;;  %v1770_v30 = vsel %vm382_vm9, %v1713_v62, 128  ;;  %v1432_v23 = vpack.c.bf16 %v106_v18, %v105_v17  ;;  %v1436_v26 = vpack.c.bf16 %v108_v25, %v107_v24 }
 0x18b   :  { %480 = vmin.xlane.f32.xlu1 %v1762_v27  ;;  %494 = vmin.xlane.f32.xlu0 %v1764_v28  ;;  %v505_v31 = vshra.s32 %v1767_v29, 16  ;;  %v519_v32 = vshra.s32 %v1770_v30, 16 }
 0x18c   :  { %v361_v33 = vpop.xlane.xlu1 %360  ;;  %v363_v34 = vpop.xlane.xlu0 %362 }
 0x18d   :  { %vm383_vm10 = vcmp.eq.f32.partialorder %v1692_v50, %v361_v33  ;;  %vm384_vm11 = vcmp.eq.f32.partialorder %v1694_v51, %v363_v34  ;;  %v1778_v35 = vcvt.s32.f32 %v505_v31  ;;  %v1780_v36 = vcvt.s32.f32 %v519_v32  ;;  %v109_v31 = vld [vmem:[%s2259_s1 + $0x50] sm:$0xff]  ;;  %v110_v32 = vld [vmem:[%s2259_s1 + $0x58] sm:$0xff] }
 0x18e   :  { %v1783_v37 = vsel %vm383_vm10, %v1713_v62, 128  ;;  %v1786_v38 = vsel %vm384_vm11, %v1713_v62, 128  ;;  %v1440_v33 = vpack.c.bf16 %v110_v32, %v109_v31  ;;  %v406_v34 = vand.u32 65535, %v1716_v0 }
 0x18f   :  { %508 = vmin.xlane.f32.xlu1 %v1778_v35  ;;  %522 = vmin.xlane.f32.xlu0 %v1780_v36  ;;  %v533_v39 = vshra.s32 %v1783_v37, 16  ;;  %v547_v40 = vshra.s32 %v1786_v38, 16 }
 0x190   :  { %v365_v41 = vpop.xlane.xlu1 %364  ;;  %v367_v42 = vpop.xlane.xlu0 %366 }
 0x191   :  { %vm385_vm12 = vcmp.eq.f32.partialorder %v1698_v54, %v365_v41  ;;  %vm386_vm13 = vcmp.eq.f32.partialorder %v1700_v55, %v367_v42  ;;  %v1794_v43 = vcvt.s32.f32 %v533_v39  ;;  %v1796_v44 = vcvt.s32.f32 %v547_v40 }
 0x192   :  { %v1799_v45 = vsel %vm385_vm12, %v1713_v62, 128  ;;  %v1802_v46 = vsel %vm386_vm13, %v1713_v62, 128  ;;  %v420_v39 = vand.u32 65535, %v1722_v5  ;;  %v434_v40 = vand.u32 65535, %v1725_v6 }
 0x193   :  { %536 = vmin.xlane.f32.xlu1 %v1794_v43  ;;  %550 = vmin.xlane.f32.xlu0 %v1796_v44  ;;  %v561_v47 = vshra.s32 %v1799_v45, 16  ;;  %v575_v48 = vshra.s32 %v1802_v46, 16  ;;  %v408_v42 = vcvt.s32.f32 %v406_v34  ;;  %v560_v18 = vand.u32 65535, %v1799_v45 }
 0x194   :  { %v369_v49 = vpop.xlane.xlu1 %368  ;;  %v371_v50 = vpop.xlane.xlu0 %370  ;;  %v422_v0 = vcvt.s32.f32 %v420_v39  ;;  %v436_v5 = vcvt.s32.f32 %v434_v40 }
 0x195   :  { %vm387_vm14 = vcmp.eq.f32.partialorder %v1704_v58, %v369_v49  ;;  %vm388_vm15 = vcmp.eq.f32.partialorder %v1706_v59, %v371_v50  ;;  %v1810_v51 = vcvt.s32.f32 %v561_v47  ;;  %v1812_v52 = vcvt.s32.f32 %v575_v48 }
 0x196   :  { %v1815_v53 = vsel %vm387_vm14, %v1713_v62, 128  ;;  %v1818_v54 = vsel %vm388_vm15, %v1713_v62, 128  ;;  %v448_v48 = vand.u32 65535, %v1735_v13  ;;  %v462_v49 = vand.u32 65535, %v1738_v14 }
 0x197   :  { %564 = vmin.xlane.f32.xlu1 %v1810_v51  ;;  %578 = vmin.xlane.f32.xlu0 %v1812_v52  ;;  %v589_v55 = vshra.s32 %v1815_v53, 16  ;;  %v603_v56 = vshra.s32 %v1818_v54, 16  ;;  %v476_v13 = vand.u32 65535, %v1751_v21  ;;  %v490_v14 = vand.u32 65535, %v1754_v22 }
 0x198   :  { %v373_v57 = vpop.xlane.xlu1 %372  ;;  %v504_v21 = vand.u32 65535, %v1767_v29  ;;  %v518_v22 = vand.u32 65535, %v1770_v30  ;;  %v532_v29 = vand.u32 65535, %v1783_v37  ;;  %v546_v30 = vand.u32 65535, %v1786_v38 }
 0x199   :  { %vm389_vm1 = vcmp.eq.f32.partialorder %v1710_v60, %v373_v57  ;;  %v1825_v58 = vcvt.s32.f32 %v589_v55  ;;  %v1827_v59 = vcvt.s32.f32 %v603_v56  ;;  %v99_v60 = vld [vmem:[%s2259_s1] sm:$0xff]  ;;  %v492_v8 = vcvt.s32.f32 %v490_v14 }
 0x19a   :  { %v1830_v61 = vsel %vm389_vm1, %v1713_v62, 128  ;;  %v1420_v7 = vpack.c.bf16 %v100_v2, %v99_v60  ;;  %v464_v60 = vcvt.s32.f32 %v462_v49  ;;  %v506_v15 = vcvt.s32.f32 %v504_v21 }
 0x19b   :  { %592 = vmin.xlane.f32.xlu1 %v1825_v58  ;;  %606 = vmin.xlane.f32.xlu0 %v1827_v59  ;;  %v617_v63 = vshra.s32 %v1830_v61, 16  ;;  %v548_v31 = vcvt.s32.f32 %v546_v30  ;;  %v588_v34 = vand.u32 65535, %v1815_v53  ;;  %v602_v39 = vand.u32 65535, %v1818_v54 }
 0x19c   :  { %1421 = vmatprep.subr.bf16.mxu0 %v1420_v7  ;;  %1452 = vmatprep.subr.bf16.mxu1 %v1420_v7  ;;  %v616_v54 = vand.u32 65535, %v1830_v61 }
 0x19d   :  { %v1835_v1 = vcvt.s32.f32 %v617_v63  ;;  %1423 = vmatpush3.bf16.msra.mxu0 %v1420_v7  ;;  %1460 = vmatpush3.bf16.msra.mxu1 %v1420_v7  ;;  %v450_v63 = vcvt.s32.f32 %v448_v48  ;;  %v478_v7 = vcvt.s32.f32 %v476_v13 }
 0x19e   :  { %1425 = vmatprep.subr.bf16.mxu0 %v1424_v9  ;;  %1453 = vmatprep.subr.bf16.mxu1 %v1424_v9 }
 0x19f   :  { %620 = vmin.xlane.f32.xlu1 %v1835_v1 }
 0x1a1   :  { %1427 = vmatpush3.bf16.msra.mxu0 %v1424_v9  ;;  %1461 = vmatpush3.bf16.msra.mxu1 %v1424_v9 }
 0x1a2   :  { %1429 = vmatprep.subr.bf16.mxu0 %v1428_v16  ;;  %1454 = vmatprep.subr.bf16.mxu1 %v1428_v16 }
 0x1a5   :  { %1431 = vmatpush3.bf16.msra.mxu0 %v1428_v16  ;;  %1462 = vmatpush3.bf16.msra.mxu1 %v1428_v16  ;;  %v520_v16 = vcvt.s32.f32 %v518_v22 }
 0x1a6   :  { %1433 = vmatprep.subr.bf16.mxu0 %v1432_v23  ;;  %1455 = vmatprep.subr.bf16.mxu1 %v1432_v23 }
 0x1a9   :  { %1435 = vmatpush3.bf16.msra.mxu0 %v1432_v23  ;;  %1463 = vmatpush3.bf16.msra.mxu1 %v1432_v23  ;;  %v574_v23 = vand.u32 65535, %v1802_v46 }
 0x1aa   :  { %1437 = vmatprep.subr.bf16.mxu0 %v1436_v26  ;;  %1456 = vmatprep.subr.bf16.mxu1 %v1436_v26 }
 0x1ad   :  { %1439 = vmatpush3.bf16.msra.mxu0 %v1436_v26  ;;  %1464 = vmatpush3.bf16.msra.mxu1 %v1436_v26  ;;  %v534_v26 = vcvt.s32.f32 %v532_v29 }
 0x1ae   :  { %1441 = vmatprep.subr.bf16.mxu0 %v1440_v33  ;;  %1457 = vmatprep.subr.bf16.mxu1 %v1440_v33 }
 0x1b1   :  { %1443 = vmatpush3.bf16.msra.mxu0 %v1440_v33  ;;  %1465 = vmatpush3.bf16.msra.mxu1 %v1440_v33  ;;  %v1538_v33 = vmov 0.0  }
 0x1b2   :  { %82 = vst [vmem:[#allocation3] sm:$0x1] %v1538_v33 }
 0x20c   :  { %v1877_v41 = vpop.xlane.xlu0 %410 }
 0x20d   :  { %vm412_vm2 = vcmp.eq.f32.partialorder %v1719_v4, %v1877_v41  ;;  %v417_v13 = vcvt.f32.s32 %v1877_v41 }
 0x20e   :  { %v413_v47 = vsel %vm412_vm2, %v408_v42, inf  ;;  %v562_v42 = vcvt.s32.f32 %v560_v18 }
 0x20f   :  { %414 = vmin.xlane.f32.xlu0 %v413_v47 }
 0x210   :  { %v1883_v50 = vpop.xlane.xlu1 %424  ;;  %v1885_v55 = vpop.xlane.xlu0 %438 }
 0x211   :  { %vm426_vm3 = vcmp.eq.f32.partialorder %v1730_v11, %v1883_v50  ;;  %vm440_vm4 = vcmp.eq.f32.partialorder %v1732_v12, %v1885_v55  ;;  %v431_v14 = vcvt.f32.s32 %v1883_v50 }
 0x212   :  { %v427_v6 = vsel %vm426_vm3, %v422_v0, inf  ;;  %v441_v4 = vsel %vm440_vm4, %v436_v5, inf  ;;  %v590_v0 = vcvt.s32.f32 %v588_v34  ;;  %v604_v5 = vcvt.s32.f32 %v602_v39 }
 0x213   :  { %428 = vmin.xlane.f32.xlu1 %v427_v6  ;;  %442 = vmin.xlane.f32.xlu0 %v441_v4  ;;  %v618_v4 = vcvt.s32.f32 %v616_v54  ;;  %vm1016_vm3 = vcmask 7168  }
 0x214   :  { %v1893_v56 = vpop.xlane.xlu1 %452  ;;  %v1895_v57 = vpop.xlane.xlu0 %466 }
 0x215   :  { %vm454_vm5 = vcmp.eq.f32.partialorder %v1746_v19, %v1893_v56  ;;  %vm468_vm6 = vcmp.eq.f32.partialorder %v1748_v20, %v1895_v57  ;;  %v459_v21 = vcvt.f32.s32 %v1893_v56  ;;  %v473_v22 = vcvt.f32.s32 %v1895_v57 }
 0x216   :  { %v455_v11 = vsel %vm454_vm5, %v450_v63, inf  ;;  %v469_v12 = vsel %vm468_vm6, %v464_v60, inf  ;;  %v418_v63 = vshll.u32 %v417_v13, 16 }
 0x217   :  { %456 = vmin.xlane.f32.xlu1 %v455_v11  ;;  %470 = vmin.xlane.f32.xlu0 %v469_v12  ;;  %v432_v12 = vshll.u32 %v431_v14, 16  ;;  %v460_v57 = vshll.u32 %v459_v21, 16 }
 0x218   :  { %v1903_v2 = vpop.xlane.xlu1 %480  ;;  %v1905_v3 = vpop.xlane.xlu0 %494 }
 0x219   :  { %vm482_vm7 = vcmp.eq.f32.partialorder %v1762_v27, %v1903_v2  ;;  %vm496_vm8 = vcmp.eq.f32.partialorder %v1764_v28, %v1905_v3  ;;  %v111_v27 = vld [vmem:[%s2259_s1 + $0x60] sm:$0xff]  ;;  %v112_v28 = vld [vmem:[%s2259_s1 + $0x68] sm:$0xff]  ;;  %v487_v29 = vcvt.f32.s32 %v1903_v2  ;;  %v501_v30 = vcvt.f32.s32 %v1905_v3 }
 0x21a   :  { %v483_v19 = vsel %vm482_vm7, %v478_v7, inf  ;;  %v497_v20 = vsel %vm496_vm8, %v492_v8, inf  ;;  %v1444_v17 = vpack.c.bf16 %v112_v28, %v111_v27 }
 0x21b   :  { %484 = vmin.xlane.f32.xlu1 %v483_v19  ;;  %498 = vmin.xlane.f32.xlu0 %v497_v20  ;;  %v474_v20 = vshll.u32 %v473_v22, 16 }
 0x21c   :  { %v1913_v9 = vpop.xlane.xlu1 %508  ;;  %v1915_v10 = vpop.xlane.xlu0 %522  ;;  %1445 = vmatprep.subr.bf16.mxu0 %v1444_v17  ;;  %1458 = vmatprep.subr.bf16.mxu1 %v1444_v17 }
 0x21d   :  { %vm510_vm9 = vcmp.eq.f32.partialorder %v1778_v35, %v1913_v9  ;;  %vm524_vm10 = vcmp.eq.f32.partialorder %v1780_v36, %v1915_v10  ;;  %v113_v35 = vld [vmem:[%s2259_s1 + $0x70] sm:$0xff]  ;;  %v114_v36 = vld [vmem:[%s2259_s1 + $0x78] sm:$0xff]  ;;  %1447 = vmatpush3.bf16.msra.mxu0 %v1444_v17  ;;  %1466 = vmatpush3.bf16.msra.mxu1 %v1444_v17  ;;  %v515_v2 = vcvt.f32.s32 %v1913_v9 }
 0x21e   :  { %v511_v37 = vsel %vm510_vm9, %v506_v15, inf  ;;  %v525_v38 = vsel %vm524_vm10, %v520_v16, inf  ;;  %v1448_v32 = vpack.c.bf16 %v114_v36, %v113_v35  ;;  %v529_v35 = vcvt.f32.s32 %v1915_v10 }
 0x21f   :  { %512 = vmin.xlane.f32.xlu1 %v511_v37  ;;  %526 = vmin.xlane.f32.xlu0 %v525_v38  ;;  %v516_v10 = vshll.u32 %v515_v2, 16 }
 0x220   :  { %v1929_v24 = vpop.xlane.xlu1 %536  ;;  %v1931_v25 = vpop.xlane.xlu0 %550  ;;  %1449 = vmatprep.subr.bf16.mxu0 %v1448_v32  ;;  %1459 = vmatprep.subr.bf16.mxu1 %v1448_v32  ;;  %v530_v54 = vshll.u32 %v529_v35, 16 }
 0x221   :  { %vm538_vm11 = vcmp.eq.f32.partialorder %v1794_v43, %v1929_v24  ;;  %vm552_vm12 = vcmp.eq.f32.partialorder %v1796_v44, %v1931_v25  ;;  %v576_v44 = vcvt.s32.f32 %v574_v23  ;;  %1451 = vmatpush3.bf16.msra.mxu0 %v1448_v32  ;;  %1467 = vmatpush3.bf16.msra.mxu1 %v1448_v32 }
 0x222   :  { %v539_v45 = vsel %vm538_vm11, %v534_v26, inf  ;;  %v553_v46 = vsel %vm552_vm12, %v548_v31, inf  ;;  %v488_v26 = vshll.u32 %v487_v29, 16  ;;  %v502_v31 = vshll.u32 %v501_v30, 16 }
 0x223   :  { %540 = vmin.xlane.f32.xlu1 %v539_v45  ;;  %554 = vmin.xlane.f32.xlu0 %v553_v46 }
 0x224   :  { %v1946_v40 = vpop.xlane.xlu1 %564  ;;  %v1948_v43 = vpop.xlane.xlu0 %578 }
 0x225   :  { %vm566_vm13 = vcmp.eq.f32.partialorder %v1810_v51, %v1946_v40  ;;  %vm580_vm14 = vcmp.eq.f32.partialorder %v1812_v52, %v1948_v43 }
 0x226   :  { %v567_v47 = vsel %vm566_vm13, %v562_v42, inf  ;;  %v581_v53 = vsel %vm580_vm14, %v576_v44, inf  ;;  %v543_v42 = vcvt.f32.s32 %v1929_v24 }
 0x227   :  { %568 = vmin.xlane.f32.xlu1 %v567_v47  ;;  %582 = vmin.xlane.f32.xlu0 %v581_v53 }
 0x228   :  { %v1955_v48 = vpop.xlane.xlu1 %592  ;;  %v1957_v49 = vpop.xlane.xlu0 %606 }
 0x229   :  { %vm594_vm15 = vcmp.eq.f32.partialorder %v1825_v58, %v1955_v48  ;;  %vm608_vm1 = vcmp.eq.f32.partialorder %v1827_v59, %v1957_v49  ;;  %v445_v59 = vcvt.f32.s32 %v1885_v55  ;;  %v1539_v55 = vmov 1.0  }
 0x22a   :  { %v595_v51 = vsel %vm594_vm15, %v590_v0, inf  ;;  %v609_v52 = vsel %vm608_vm1, %v604_v5, inf  ;;  %v557_v0 = vcvt.f32.s32 %v1931_v25  ;;  %v613_v30 = vcvt.f32.s32 %v1957_v49 }
 0x22b   :  { %596 = vmin.xlane.f32.xlu1 %v595_v51  ;;  %610 = vmin.xlane.f32.xlu0 %v609_v52  ;;  %v446_v8 = vshll.u32 %v445_v59, 16 }
 0x22c   :  { %v1963_v6 = vpop.xlane.xlu1 %620 }
 0x22d   :  { %vm622_vm2 = vcmp.eq.f32.partialorder %v1835_v1, %v1963_v6 }
 0x22e   :  { %v623_v61 = vsel %vm622_vm2, %v618_v4, inf }
 0x22f   :  { %624 = vmin.xlane.f32.xlu1 %v623_v61  ;;  %v571_v61 = vcvt.f32.s32 %v1946_v40 }
 0x29c   :  { %v415_v58 = vpop.xlane.xlu0 %414 }
 0x29d   :  { %v416_v60 = vcvt.f32.s32 %v415_v58  ;;  %v544_v58 = vshll.u32 %v543_v42, 16 }
 0x29f   :  { %v419_v11 = vadd.s32 %v418_v63, %v416_v60 }
 0x2a0   :  { %v429_v7 = vpop.xlane.xlu1 %428  ;;  %v443_v1 = vpop.xlane.xlu0 %442 }
 0x2a1   :  { %1017 = vst.msk [vmem:[%s2264_s6] sm:$0xff] %vm1016_vm3, %v419_v11  ;;  %v430_v41 = vcvt.f32.s32 %v429_v7  ;;  %v444_v50 = vcvt.f32.s32 %v443_v1  ;;  %vm630_vm4 = vcmp.eq.s32.totalorder %v1713_v62, %v419_v11  ;;  %v558_v11 = vshll.u32 %v557_v0, 16 }
 0x2a2   :  { %1380 = vmatprep.mubr.msk.f32.mxu0 %vm630_vm4, %v1539_v55  ;;  %v1157_v37 = vsel %vm630_vm4, 1.0, %v1538_v33 }
 0x2a3   :  { %v433_v56 = vadd.s32 %v432_v12, %v430_v41  ;;  %v447_v19 = vadd.s32 %v446_v8, %v444_v50  ;;  %v585_v12 = vcvt.f32.s32 %v1948_v43  ;;  %v572_v43 = vshll.u32 %v571_v61, 16 }
 0x2a4   :  { %v457_v15 = vpop.xlane.xlu1 %456  ;;  %v471_v16 = vpop.xlane.xlu0 %470 }
 0x2a5   :  { %vm631_vm5 = vcmp.eq.s32.totalorder %v1713_v62, %v433_v56  ;;  %1018 = vst.msk [vmem:[%s2264_s6 + $0x8] sm:$0xff] %vm1016_vm3, %v433_v56  ;;  %1019 = vst.msk [vmem:[%s2264_s6 + $0x10] sm:$0xff] %vm1016_vm3, %v447_v19  ;;  %v458_v27 = vcvt.f32.s32 %v457_v15  ;;  %v472_v28 = vcvt.f32.s32 %v471_v16  ;;  %vm632_vm6 = vcmp.eq.s32.totalorder %v1713_v62, %v447_v19 }
 0x2a6   :  { %v1158_v3 = vsel %vm631_vm5, 1.0, %v1538_v33  ;;  %1381 = vmatmul.mubr.msk.f32.vlgmr.msra.gmra.mrb[16].mxu0 %vm631_vm5, %v1539_v55  ;;  %v1159_v9 = vsel %vm632_vm6, 1.0, %v1538_v33  ;;  %v599_v56 = vcvt.f32.s32 %v1955_v48  ;;  %v586_v29 = vshll.u32 %v585_v12, 16  ;;  %v896_v12 = vld [vmem:[#allocation3] sm:$0x1] }
 0x2a7   :  { %v897_v38 = vadd.f32 %v1158_v3, %v1157_v37  ;;  %v1222_v17 = vpack.c.bf16 %v1158_v3, %v1157_v37  ;;  %v461_v18 = vadd.s32 %v460_v57, %v458_v27  ;;  %1383 = vmatprep.mubr.msk.f32.mxu0 %vm632_vm6, %v1539_v55  ;;  %v475_v23 = vadd.s32 %v474_v20, %v472_v28 }
 0x2a8   :  { %v485_v36 = vpop.xlane.xlu1 %484  ;;  %v499_v45 = vpop.xlane.xlu0 %498  ;;  %v600_v37 = vshll.u32 %v599_v56, 16 }
 0x2a9   :  { %1223 = vst [vmem:[#allocation4] sm:$0xff] %v1222_v17   ;;  %1020 = vst.msk [vmem:[%s2264_s6 + $0x18] sm:$0xff] %vm1016_vm3, %v461_v18  ;;  %v898_v46 = vadd.f32 %v1159_v9, %v897_v38  ;;  %v486_v32 = vcvt.f32.s32 %v485_v36  ;;  %v500_v34 = vcvt.f32.s32 %v499_v45  ;;  %vm633_vm7 = vcmp.eq.s32.totalorder %v1713_v62, %v461_v18 }
 0x2aa   :  { %1021 = vst.msk [vmem:[%s2264_s6 + $0x20] sm:$0xff] %vm1016_vm3, %v475_v23  ;;  %v1160_v39 = vsel %vm633_vm7, 1.0, %v1538_v33  ;;  %1384 = vmatmul.mubr.msk.f32.gmra.mrb[18].mxu0 %vm633_vm7, %v1539_v55  ;;  %vm634_vm8 = vcmp.eq.s32.totalorder %v1713_v62, %v475_v23  ;;  %v614_v23 = vshll.u32 %v613_v30, 16  ;;  %v1477_v30 = vld [vmem:[%s2258_s0 + $0x10] sm:$0xff] }
 0x2ab   :  { %v489_v44 = vadd.s32 %v488_v26, %v486_v32  ;;  %v503_v47 = vadd.s32 %v502_v31, %v500_v34  ;;  %v1225_v53 = vpack.c.bf16 %v1160_v39, %v1159_v9  ;;  %1386 = vmatprep.mubr.msk.f32.mxu1 %vm634_vm8, %v1539_v55  ;;  %v1161_v5 = vsel %vm634_vm8, 1.0, %v1538_v33 }
 0x2ac   :  { %v899_v51 = vadd.f32 %v1160_v39, %v898_v46  ;;  %v513_v52 = vpop.xlane.xlu1 %512  ;;  %v527_v4 = vpop.xlane.xlu0 %526  ;;  %v627_v26 = vcvt.f32.s32 %v1963_v6 }
 0x2ad   :  { %1022 = vst.msk [vmem:[%s2264_s6 + $0x28] sm:$0xff] %vm1016_vm3, %v489_v44  ;;  %1023 = vst.msk [vmem:[%s2264_s6 + $0x30] sm:$0xff] %vm1016_vm3, %v503_v47  ;;  %vm635_vm9 = vcmp.eq.s32.totalorder %v1713_v62, %v489_v44  ;;  %v514_v24 = vcvt.f32.s32 %v513_v52  ;;  %v528_v25 = vcvt.f32.s32 %v527_v4  ;;  %vm636_vm10 = vcmp.eq.s32.totalorder %v1713_v62, %v503_v47 }
 0x2ae   :  { %1245 = vst [vmem:[#allocation4 + $0x8] sm:$0xff] %v1225_v53   ;;  %v1162_v13 = vsel %vm635_vm9, 1.0, %v1538_v33  ;;  %v900_v14 = vadd.f32 %v1161_v5, %v899_v51  ;;  %1387 = vmatmul.mubr.msk.f32.vlgmr.msra.gmra.mrb[0].mxu1 %vm635_vm9, %v1539_v55  ;;  %v1163_v22 = vsel %vm636_vm10, 1.0, %v1538_v33  ;;  %v628_v42 = vshll.u32 %v627_v26, 16 }
 0x2af   :  { %v1228_v63 = vpack.c.bf16 %v1162_v13, %v1161_v5  ;;  %v517_v59 = vadd.s32 %v516_v10, %v514_v24  ;;  %v531_v60 = vadd.s32 %v530_v54, %v528_v25  ;;  %1389 = vmatprep.mubr.msk.f32.mxu1 %vm636_vm10, %v1539_v55 }
 0x2b0   :  { %v901_v21 = vadd.f32 %v1162_v13, %v900_v14  ;;  %v541_v7 = vpop.xlane.xlu1 %540  ;;  %v555_v1 = vpop.xlane.xlu0 %554 }
 0x2b1   :  { %1246 = vst [vmem:[#allocation4 + $0x10] sm:$0xff] %v1228_v63   ;;  %1024 = vst.msk [vmem:[%s2264_s6 + $0x38] sm:$0xff] %vm1016_vm3, %v517_v59  ;;  %v542_v40 = vcvt.f32.s32 %v541_v7  ;;  %v556_v8 = vcvt.f32.s32 %v555_v1  ;;  %vm637_vm11 = vcmp.eq.s32.totalorder %v1713_v62, %v517_v59  ;;  %vm638_vm12 = vcmp.eq.s32.totalorder %v1713_v62, %v531_v60 }
 0x2b2   :  { %1025 = vst.msk [vmem:[%s2264_s6 + $0x40] sm:$0xff] %vm1016_vm3, %v531_v60  ;;  %v902_v41 = vadd.f32 %v1163_v22, %v901_v21  ;;  %v1164_v50 = vsel %vm637_vm11, 1.0, %v1538_v33  ;;  %1390 = vmatmul.mubr.msk.f32.gmra.mrb[2].mxu1 %vm637_vm11, %v1539_v55  ;;  %v1165_v16 = vsel %vm638_vm12, 1.0, %v1538_v33 }
 0x2b3   :  { %v545_v19 = vadd.s32 %v544_v58, %v542_v40  ;;  %v559_v57 = vadd.s32 %v558_v11, %v556_v8  ;;  %v1231_v20 = vpack.c.bf16 %v1164_v50, %v1163_v22  ;;  %1392 = vmatprep.mubr.msk.f32.mxu1 %vm638_vm12, %v1539_v55  ;;  %v1475_v8 = vld [vmem:[%s2258_s0] sm:$0xff] }
 0x2b4   :  { %v903_v15 = vadd.f32 %v1164_v50, %v902_v41  ;;  %v569_v27 = vpop.xlane.xlu1 %568  ;;  %v583_v28 = vpop.xlane.xlu0 %582 }
 0x2b5   :  { %1026 = vst.msk [vmem:[%s2264_s6 + $0x48] sm:$0xff] %vm1016_vm3, %v545_v19  ;;  %1027 = vst.msk [vmem:[%s2264_s6 + $0x50] sm:$0xff] %vm1016_vm3, %v559_v57  ;;  %v570_v48 = vcvt.f32.s32 %v569_v27  ;;  %v584_v2 = vcvt.f32.s32 %v583_v28  ;;  %vm639_vm13 = vcmp.eq.s32.totalorder %v1713_v62, %v545_v19  ;;  %vm640_vm14 = vcmp.eq.s32.totalorder %v1713_v62, %v559_v57  ;;  %v1476_v19 = vld [vmem:[%s2258_s0 + $0x18] sm:$0xff] }
 0x2b6   :  { %1247 = vst [vmem:[#allocation4 + $0x18] sm:$0xff] %v1231_v20   ;;  %v904_v49 = vadd.f32 %v1165_v16, %v903_v15  ;;  %v1166_v3 = vsel %vm639_vm13, 1.0, %v1538_v33  ;;  %1393 = vmatmul.mubr.msk.f32.gmra.mrb[4].mxu1 %vm639_vm13, %v1539_v55  ;;  %v1167_v35 = vsel %vm640_vm14, 1.0, %v1538_v33 }
 0x2b7   :  { %v573_v38 = vadd.s32 %v572_v43, %v570_v48  ;;  %v587_v17 = vadd.s32 %v586_v29, %v584_v2  ;;  %v1234_v18 = vpack.c.bf16 %v1166_v3, %v1165_v16  ;;  %1395 = vmatprep.mubr.msk.f32.mxu1 %vm640_vm14, %v1539_v55  ;;  %v1478_v2 = vld [vmem:[%s2258_s0 + $0x28] sm:$0xff] }
 0x2b8   :  { %v905_v31 = vadd.f32 %v1166_v3, %v904_v49  ;;  %v597_v9 = vpop.xlane.xlu1 %596  ;;  %v611_v36 = vpop.xlane.xlu0 %610 }
 0x2b9   :  { %1028 = vst.msk [vmem:[%s2264_s6 + $0x58] sm:$0xff] %vm1016_vm3, %v573_v38  ;;  %1029 = vst.msk [vmem:[%s2264_s6 + $0x60] sm:$0xff] %vm1016_vm3, %v587_v17  ;;  %v598_v45 = vcvt.f32.s32 %v597_v9  ;;  %v612_v46 = vcvt.f32.s32 %v611_v36  ;;  %vm641_vm15 = vcmp.eq.s32.totalorder %v1713_v62, %v573_v38  ;;  %vm642_vm1 = vcmp.eq.s32.totalorder %v1713_v62, %v587_v17  ;;  %v1479_v38 = vld [vmem:[%s2258_s0 + $0x20] sm:$0xff]  ;;  %v1480_v36 = vld [vmem:[%s2258_s0 + $0x38] sm:$0xff] }
 0x2ba   :  { %1248 = vst [vmem:[#allocation4 + $0x20] sm:$0xff] %v1234_v18   ;;  %v906_v6 = vadd.f32 %v1167_v35, %v905_v31  ;;  %v1168_v32 = vsel %vm641_vm15, 1.0, %v1538_v33  ;;  %1396 = vmatmul.mubr.msk.f32.gmra.mrb[6].mxu1 %vm641_vm15, %v1539_v55  ;;  %v1169_v53 = vsel %vm642_vm1, 1.0, %v1538_v33 }
 0x2bb   :  { %v601_v34 = vadd.s32 %v600_v37, %v598_v45  ;;  %v615_v10 = vadd.s32 %v614_v23, %v612_v46  ;;  %v1237_v39 = vpack.c.bf16 %v1168_v32, %v1167_v35  ;;  %1398 = vmatprep.mubr.msk.f32.mxu1 %vm642_vm1, %v1539_v55 }
 0x2bc   :  { %v907_v44 = vadd.f32 %v1168_v32, %v906_v6  ;;  %v625_v47 = vpop.xlane.xlu1 %624  ;;  %v1481_v32 = vld [vmem:[%s2258_s0 + $0x30] sm:$0xff] }
 0x2bd   :  { %1030 = vst.msk [vmem:[%s2264_s6 + $0x68] sm:$0xff] %vm1016_vm3, %v601_v34  ;;  %1031 = vst.msk [vmem:[%s2264_s6 + $0x70] sm:$0xff] %vm1016_vm3, %v615_v10  ;;  %v626_v54 = vcvt.f32.s32 %v625_v47  ;;  %vm643_vm2 = vcmp.eq.s32.totalorder %v1713_v62, %v601_v34  ;;  %vm644_vm4 = vcmp.eq.s32.totalorder %v1713_v62, %v615_v10 }
 0x2be   :  { %1249 = vst [vmem:[#allocation4 + $0x28] sm:$0xff] %v1237_v39   ;;  %v908_v0 = vadd.f32 %v1169_v53, %v907_v44  ;;  %v1170_v5 = vsel %vm643_vm2, 1.0, %v1538_v33  ;;  %1399 = vmatmul.mubr.msk.f32.gmra.mrb[8].mxu1 %vm643_vm2, %v1539_v55  ;;  %v1171_v24 = vsel %vm644_vm4, 1.0, %v1538_v33 }
 0x2bf   :  { %v629_v51 = vadd.s32 %v628_v42, %v626_v54  ;;  %v1240_v52 = vpack.c.bf16 %v1170_v5, %v1169_v53  ;;  %1401 = vmatprep.mubr.msk.f32.mxu1 %vm644_vm4, %v1539_v55  ;;  %v1482_v54 = vld [vmem:[%s2258_s0 + $0x48] sm:$0xff] }
 0x2c0   :  { %v909_v4 = vadd.f32 %v1170_v5, %v908_v0 }
 0x2c1   :  { %1032 = vst.msk [vmem:[%s2264_s6 + $0x78] sm:$0xff] %vm1016_vm3, %v629_v51  ;;  %1250 = vst [vmem:[#allocation4 + $0x30] sm:$0xff] %v1240_v52   ;;  %vm645_vm5 = vcmp.eq.s32.totalorder %v1713_v62, %v629_v51  ;;  %vm80_vm3 = vcmask 516096   ;;  %v1483_v52 = vld [vmem:[%s2258_s0 + $0x40] sm:$0xff] }
 0x2c2   :  { %v910_v25 = vadd.f32 %v1171_v24, %v909_v4  ;;  %v1172_v61 = vsel %vm645_vm5, 1.0, %v1538_v33  ;;  %1402 = vmatmul.mubr.msk.f32.gmra.mrb[10].mxu1 %vm645_vm5, %v1539_v55  ;;  %81 = vst.msk [vmem:[#allocation2] sm:$0x1] %vm80_vm3, %v1538_v33  ;;  %v1474_v55 = vld [vmem:[%s2258_s0 + $0x8] sm:$0xff] }
 0x2c3   :  { %v1243_v13 = vpack.c.bf16 %v1172_v61, %v1171_v24 }
 0x2c4   :  { %v911_v14 = vadd.f32 %v1172_v61, %v910_v25 }
 0x2c5   :  { %1251 = vst [vmem:[#allocation4 + $0x38] sm:$0xff] %v1243_v13  }
 0x2c6   :  { %v912_v58 = vrot.slane %v911_v14, 4 }
 0x2c8   :  { %v913_v63 = vadd.f32 %v912_v58, %v911_v14 }
 0x2ca   :  { %v914_v59 = vrot.slane %v913_v63, 2 }
 0x2cc   :  { %v915_v60 = vadd.f32 %v914_v59, %v913_v63  ;;  %v1484_v63 = vld [vmem:[%s2258_s0 + $0x58] sm:$0xff] }
 0x2ce   :  { %v916_v11 = vrot.slane %v915_v60, 1 }
 0x2d0   :  { %v917_v21 = vadd.f32 %v916_v11, %v915_v60 }
 0x2d2   :  { %v918_v22 = vadd.f32 %v917_v21, %v896_v12  ;;  %v1485_v12 = vld [vmem:[%s2258_s0 + $0x50] sm:$0xff] }
 0x2d4   :  { %919 = vst [vmem:[#allocation3] sm:$0x1] %v918_v22 }
 0x2db   :  { %v1042_v7 = vld [vmem:[#allocation3] sm:$0x1] }
 0x2dc   :  { %1043 = vst [vmem:[%s2266_s8] sm:$0x1] %v1042_v7 }
 0x379   :  { %v1382_v62 = vpop.f32.mrb[16].mxu0 }
 0x37a   :  { %v824_v1 = vsub.f32 %v1382_v62, %v1474_v55  ;;  %921 = vst.msk [vmem:[%s2262_s4 + $0x8] sm:$0xff] %vm123_vm0, %v1382_v62  ;;  %v744_v40 = vpop.f32.mrb[17].mxu0 }
 0x37b   :  { %v823_v43 = vsub.f32 %v744_v40, %v1475_v8  ;;  %920 = vst.msk [vmem:[%s2262_s4] sm:$0xff] %vm123_vm0, %v744_v40  ;;  %v1486_v8 = vld [vmem:[%s2258_s0 + $0x68] sm:$0xff] }
 0x37c   :  { %v841_v33 = vmul.f32 %v824_v1, %v824_v1 }
 0x37d   :  { %v840_v41 = vmul.f32 %v823_v43, %v823_v43  ;;  %v1385_v50 = vpop.f32.mrb[18].mxu0 }
 0x37e   :  { %v857_v56 = vsel %vm123_vm0, %v841_v33, 0.0  ;;  %v826_v57 = vsub.f32 %v1385_v50, %v1476_v19  ;;  %923 = vst.msk [vmem:[%s2262_s4 + $0x18] sm:$0xff] %vm123_vm0, %v1385_v50  ;;  %v754_v20 = vpop.f32.mrb[19].mxu0  ;;  %v1487_v50 = vld [vmem:[%s2258_s0 + $0x60] sm:$0xff] }
 0x37f   :  { %v856_v29 = vsel %vm123_vm0, %v840_v41, 0.0  ;;  %v825_v15 = vsub.f32 %v754_v20, %v1477_v30  ;;  %922 = vst.msk [vmem:[%s2262_s4 + $0x10] sm:$0xff] %vm123_vm0, %v754_v20 }
 0x380   :  { %v858_v16 = vadd.f32 %v857_v56, %v856_v29  ;;  %v843_v27 = vmul.f32 %v826_v57, %v826_v57 }
 0x381   :  { %v842_v28 = vmul.f32 %v825_v15, %v825_v15  ;;  %v1388_v48 = vpop.f32.mrb[0].mxu1 }
 0x382   :  { %v828_v49 = vsub.f32 %v1388_v48, %v1478_v2  ;;  %925 = vst.msk [vmem:[%s2262_s4 + $0x28] sm:$0xff] %vm123_vm0, %v1388_v48  ;;  %v764_v3 = vpop.f32.mrb[1].mxu1  ;;  %v861_v23 = vsel %vm123_vm0, %v843_v27, 0.0  ;;  %v1489_v2 = vld [vmem:[%s2258_s0 + $0x70] sm:$0xff] }
 0x383   :  { %v859_v37 = vsel %vm123_vm0, %v842_v28, 0.0  ;;  %v827_v17 = vsub.f32 %v764_v3, %v1479_v38  ;;  %924 = vst.msk [vmem:[%s2262_s4 + $0x20] sm:$0xff] %vm123_vm0, %v764_v3 }
 0x384   :  { %v860_v18 = vadd.f32 %v859_v37, %v858_v16  ;;  %v845_v26 = vmul.f32 %v828_v49, %v828_v49  ;;  %v1488_v16 = vld [vmem:[%s2258_s0 + $0x78] sm:$0xff]  ;;  %s1540_s0 = smov [#allocation4]  }
 0x385   :  { %v844_v31 = vmul.f32 %v827_v17, %v827_v17  ;;  %v1391_v35 = vpop.f32.mrb[2].mxu1 }
 0x386   :  { %v862_v9 = vadd.f32 %v861_v23, %v860_v18  ;;  %v830_v45 = vsub.f32 %v1391_v35, %v1480_v36  ;;  %927 = vst.msk [vmem:[%s2262_s4 + $0x38] sm:$0xff] %vm123_vm0, %v1391_v35  ;;  %v774_v46 = vpop.f32.mrb[3].mxu1  ;;  %v865_v39 = vsel %vm123_vm0, %v845_v26, 0.0 }
 0x387   :  { %v863_v6 = vsel %vm123_vm0, %v844_v31, 0.0  ;;  %v829_v34 = vsub.f32 %v774_v46, %v1481_v32  ;;  %926 = vst.msk [vmem:[%s2262_s4 + $0x30] sm:$0xff] %vm123_vm0, %v774_v46  ;;  %v839_v32 = vld [vmem:[#allocation2] sm:$0x1] }
 0x388   :  { %v864_v10 = vadd.f32 %v863_v6, %v862_v9  ;;  %v847_v42 = vmul.f32 %v830_v45, %v830_v45 }
 0x389   :  { %v846_v44 = vmul.f32 %v829_v34, %v829_v34  ;;  %v1394_v47 = vpop.f32.mrb[4].mxu1 }
 0x38a   :  { %v866_v53 = vadd.f32 %v865_v39, %v864_v10  ;;  %v832_v0 = vsub.f32 %v1394_v47, %v1482_v54  ;;  %929 = vst.msk [vmem:[%s2262_s4 + $0x48] sm:$0xff] %vm123_vm0, %v1394_v47  ;;  %v784_v5 = vpop.f32.mrb[5].mxu1  ;;  %v869_v25 = vsel %vm123_vm0, %v847_v42, 0.0 }
 0x38b   :  { %v867_v51 = vsel %vm123_vm0, %v846_v44, 0.0  ;;  %v831_v4 = vsub.f32 %v784_v5, %v1483_v52  ;;  %928 = vst.msk [vmem:[%s2262_s4 + $0x40] sm:$0xff] %vm123_vm0, %v784_v5 }
 0x38c   :  { %v868_v24 = vadd.f32 %v867_v51, %v866_v53  ;;  %v849_v61 = vmul.f32 %v832_v0, %v832_v0 }
 0x38d   :  { %v848_v13 = vmul.f32 %v831_v4, %v831_v4  ;;  %v1397_v14 = vpop.f32.mrb[6].mxu1 }
 0x38e   :  { %v870_v58 = vadd.f32 %v869_v25, %v868_v24  ;;  %v834_v59 = vsub.f32 %v1397_v14, %v1484_v63  ;;  %931 = vst.msk [vmem:[%s2262_s4 + $0x58] sm:$0xff] %vm123_vm0, %v1397_v14  ;;  %v794_v60 = vpop.f32.mrb[7].mxu1  ;;  %v873_v7 = vsel %vm123_vm0, %v849_v61, 0.0 }
 0x38f   :  { %v871_v11 = vsel %vm123_vm0, %v848_v13, 0.0  ;;  %v833_v21 = vsub.f32 %v794_v60, %v1485_v12  ;;  %930 = vst.msk [vmem:[%s2262_s4 + $0x50] sm:$0xff] %vm123_vm0, %v794_v60 }
 0x390   :  { %v872_v22 = vadd.f32 %v871_v11, %v870_v58  ;;  %v851_v62 = vmul.f32 %v834_v59, %v834_v59 }
 0x391   :  { %v850_v55 = vmul.f32 %v833_v21, %v833_v21  ;;  %v1400_v1 = vpop.f32.mrb[8].mxu1 }
 0x392   :  { %v874_v40 = vadd.f32 %v873_v7, %v872_v22  ;;  %v836_v43 = vsub.f32 %v1400_v1, %v1486_v8  ;;  %933 = vst.msk [vmem:[%s2262_s4 + $0x68] sm:$0xff] %vm123_vm0, %v1400_v1  ;;  %v804_v33 = vpop.f32.mrb[9].mxu1  ;;  %v877_v57 = vsel %vm123_vm0, %v851_v62, 0.0 }
 0x393   :  { %v875_v41 = vsel %vm123_vm0, %v850_v55, 0.0  ;;  %v835_v56 = vsub.f32 %v804_v33, %v1487_v50  ;;  %932 = vst.msk [vmem:[%s2262_s4 + $0x60] sm:$0xff] %vm123_vm0, %v804_v33 }
 0x394   :  { %v876_v19 = vadd.f32 %v875_v41, %v874_v40  ;;  %v853_v20 = vmul.f32 %v836_v43, %v836_v43 }
 0x395   :  { %v852_v29 = vmul.f32 %v835_v56, %v835_v56  ;;  %v1403_v30 = vpop.f32.mrb[10].mxu1 }
 0x396   :  { %v878_v15 = vadd.f32 %v877_v57, %v876_v19  ;;  %v838_v27 = vsub.f32 %v1403_v30, %v1488_v16  ;;  %935 = vst.msk [vmem:[%s2262_s4 + $0x78] sm:$0xff] %vm123_vm0, %v1403_v30  ;;  %v814_v28 = vpop.f32.mrb[11].mxu1  ;;  %v881_v37 = vsel %vm123_vm0, %v853_v20, 0.0 }
 0x397   :  { %v879_v48 = vsel %vm123_vm0, %v852_v29, 0.0  ;;  %v837_v49 = vsub.f32 %v814_v28, %v1489_v2  ;;  %934 = vst.msk [vmem:[%s2262_s4 + $0x70] sm:$0xff] %vm123_vm0, %v814_v28  ;;  %s1069_s4 = sshll.u32 %s1540_s0, 4  ;;  %s1070_s4 = int_to_ptr.vmem [resolvable:$true] %s1069_s4 }
 0x398   :  { %v880_v3 = vadd.f32 %v879_v48, %v878_v15  ;;  %v855_v38 = vmul.f32 %v838_v27, %v838_v27  ;;  %s1490_s3 = scalar_lea.vmem %s1070_s4, 1024  ;;  %p1495_p1 = scmp.lt.s32.totalorder %s1070_s4, %s1070_s4 }
 0x399   :  { %v854_v17 = vmul.f32 %v837_v49, %v837_v49  ;;  %p1491_p0 = scmp.ne.s32.totalorder %s1070_s4, %s1490_s3  ;;  %p1496_p2 = scmp.lt.s32.totalorder %s1490_s3, %s1490_s3 }
 0x39a   :  { %v882_v18 = vadd.f32 %v881_v37, %v880_v3  ;;  %v885_v31 = vsel %vm123_vm0, %v855_v38, 0.0 }
 0x39b   :  { %v883_v23 = vsel %vm123_vm0, %v854_v17, 0.0  ;;  %p1497_p3 = por %p1496_p2, %p1495_p1 }
 0x39c   :  { %v884_v26 = vadd.f32 %v883_v23, %v882_v18 }
 0x39d   :  { %p1498_p4 = pnand %p1497_p3, %p1491_p0 }
 0x39e   :  { %v886_v35 = vadd.f32 %v885_v31, %v884_v26 }
 0x3a0   :  { %v887_v9 = vrot.slane %v886_v35, 4 }
 0x3a2   :  { %v888_v36 = vadd.f32 %v887_v9, %v886_v35 }
 0x3a4   :  { %v889_v45 = vrot.slane %v888_v36, 2 }
 0x3a6   :  { %v890_v46 = vadd.f32 %v889_v45, %v888_v36 }
 0x3a8   :  { %v891_v6 = vrot.slane %v890_v46, 1 }
 0x3aa   :  { %v892_v34 = vadd.f32 %v891_v6, %v890_v46 }
 0x3ac   :  { %v893_v10 = vadd.f32 %v892_v34, %v839_v32 }
 0x3ae   :  { %895 = vst.msk [vmem:[#allocation2] sm:$0x1] %vm80_vm3, %v893_v10 }
 0x3b5   :  { %v1036_v39 = vld [vmem:[#allocation2] sm:$0x1] }
 0x3b6   :  { %v1037_v42 = vsel %vm80_vm3, %v1036_v39, 0.0 }
 0x3b7   :  { %1038 = vadd.xlane.f32.xlu0 %v1037_v42 }
 0x3b8   :  { %1501 = shalt.err (!%p1498_p4)
}
 0x3b9   :  { %s1502_s11 = scalar_lea.hbm %s2263_s5, 1024 }
 0x3ba   :  { %p1503_p5 = scmp.ne.s32.totalorder %s2263_s5, %s1502_s11  ;;  %p1506_p6 = scmp.lt.u32.totalorder %s1502_s11, %s2263_s5 }
 0x3bc   :  { %p1508_p7 = pnand %p1506_p6, %p1503_p5 }
 0x3be   :  { %1511 = shalt.err (!%p1508_p7)
}
 0x3bf   :  { %s1541_s1 = smov 64   ;;  %s1542_s16 = smov 4   ;;  %vm1040_vm0 = vcmask 0  }
 0x3c0   :  { %1075 = dma.vmem_to_hbm [thread:$0]  %s1070_s4, 1024, %s2263_s5, [#allocation5], %s1541_s1, %s1541_s1, %s1542_s16  }
 0x3c1   :  { %s1543_s19 = smov [#allocation6]  }
 0x3c2   :  { %s1086_s20 = sshll.u32 %s1543_s19, 4  ;;  %s1087_s20 = int_to_ptr.vmem [resolvable:$true] %s1086_s20 }
 0x3c3   :  { %s1512_s21 = scalar_lea.vmem %s1087_s20, 16  ;;  %s1516_s6 = scalar_lea.vmem %s1087_s20, 32 }
 0x3c4   :  { %p1513_p8 = scmp.ne.s32.totalorder %s1087_s20, %s1512_s21  ;;  %p1517_p9 = scmp.lt.s32.totalorder %s1087_s20, %s1087_s20 }
 0x3c5   :  { %p1518_p10 = scmp.lt.s32.totalorder %s1516_s6, %s1512_s21 }
 0x3c7   :  { %p1519_p11 = por %p1518_p10, %p1517_p9 }
 0x3c9   :  { %p1520_p12 = pnand %p1519_p11, %p1513_p8 }
 0x444   :  { %v1039_v44 = vpop.xlane.xlu0 %1038 }
 0x445   :  { %1041 = vst.msk [vmem:[#allocation6] sm:$0x1] %vm1040_vm0, %v1039_v44 }
 0x446   :  { %1523 = shalt.err (!%p1520_p12)
}
 0x447   :  { %s1524_s24 = scalar_lea.hbm %s2265_s7, 16 }
 0x448   :  { %p1525_p13 = scmp.ne.s32.totalorder %s2265_s7, %s1524_s24  ;;  %p1528_p0 = scmp.lt.u32.totalorder %s1524_s24, %s2265_s7 }
 0x44a   :  { %p1530_p1 = pnand %p1528_p0, %p1525_p13 }
 0x44c   :  { %1533 = shalt.err (!%p1530_p1)
}
 0x44d   :  { %1089 = dma.vmem_to_hbm [thread:$0]  %s1087_s20, 16, %s2265_s7, [#allocation7]  }
 0x44e   :  { %1534 = dma.done.wait [#allocation5], 1024  }
 0x44f   :  { %1535 = vsyncadd [#allocation5], 4294966272 }
 0x450   :  { %1536 = dma.done.wait [#allocation7], 16  }
 0x451   :  { %1537 = vsyncadd [#allocation7], 4294967280 }
 0x452   :  { %1116 = vsyncpa [#allocation5], 1 }
 0x453   :  { %1117 = vsyncpa [#allocation7], 1 }

</bundles_post_ra>
